<compile_context>
chip_gen: v7x
topology: tpu7x:2x2x1
jax: 0.10.0
libtpu: 0.0.40
codegen_flags: <defaults>
</compile_context>

<pallas_src>
import jax
import jax.numpy as jnp
from jax import lax
from jax.experimental import pallas as pl
from jax.experimental.pallas import tpu as pltpu

# --- static module configuration (the PyTorch __init__ args) -----------------
CENTERS = [[0.0, 0.0, 0.0], [0.5, 0.5, 0.5]]
SPREADS = [[5.0, 5.0, 5.0], [2.0, 2.0, 2.0]]
T0 = 0.0          # initial_condition_time
W0 = 1.0          # SIREN frequency of the synthetic trained model (folded; only valid for W0 == 1)
N_POINTS = 256
HIDDEN = 32
BATCH = 2

SDF_W = 5000.0
NORMAL_W = 500.0
LS_W = 1000.0


# -----------------------------------------------------------------------------
# Pallas kernel: everything after the autograd of pred_sdf happens here.
# One grid step == one point set (batch element).
# -----------------------------------------------------------------------------
def _loss_vf_kernel(coords_ref, pred_ref, grad_ref, colw_ref, roww_ref, b2_ref,
                    out_ref):
    # coords: (4, N) = [x, y, z, t]; pred: (1, N); grad: (4, N) = [gx, gy, gz, gt]
    coords = coords_ref[...]
    x = coords[0:1, :]
    y = coords[1:2, :]
    z = coords[2:3, :]
    t = coords[3:4, :]
    pred = pred_ref[...]
    grad = grad_ref[...]
    gx = grad[0:1, :]
    gy = grad[1:2, :]
    gz = grad[2:3, :]
    ft = grad[3:4, :]
    n = x.shape[1]

    # ---- trained model forward + analytic gradient wrt its (x,y,z) input ----
    # f(p) = sin(p @ W1 + b1) @ W2 + b2          (W0 == 1.0 folded away)
    # K=3 layer done as broadcast FMAs on the VPU instead of a padded MXU op.
    w1x = colw_ref[:, 0:1]          # (H, 1)
    w1y = colw_ref[:, 1:2]
    w1z = colw_ref[:, 2:3]
    b1 = colw_ref[:, 3:4]
    w2c = colw_ref[:, 4:5]

    pre = w1x * x + w1y * y + w1z * z + b1               # (H, N) f32
    h_bf = jnp.sin(pre).astype(jnp.bfloat16)             # (H, N) bf16
    cw_bf = (jnp.cos(pre) * w2c).astype(jnp.bfloat16)    # (H, N) bf16

    # Single merged MXU dot: (4, H) @ (H, 2N).  Lanes [0:N) carry sin(pre)
    # (-> trained_model_out via roww row 0 = w2^T), lanes [N:2N) carry
    # cos(pre)*w2 (-> grad_trained_model via roww rows 1:4 = w1).
    hh = jnp.concatenate([h_bf, cw_bf], axis=1)          # (H, 2N) bf16
    res = jnp.dot(roww_ref[...], hh,
                  preferred_element_type=jnp.float32)    # (4, 2N) f32
    tm_out = res[0:1, 0:n] + b2_ref[...]                 # (1, N)
    gtx = res[1:2, n:2 * n]                              # (1, N)
    gty = res[2:3, n:2 * n]
    gtz = res[3:4, n:2 * n]

    # ---- level set constraint ------------------------------------------------
    Vx = Vy = Vz = None
    for center, spread in zip(CENTERS, SPREADS):
        cx, cy, cz = (float(c) for c in center)
        kx, ky, kz = (-1.0 / (2.0 * float(s) ** 2) for s in spread)
        vx = x if cx == 0.0 else x - cx
        vy = y if cy == 0.0 else y - cy
        vz = z if cz == 0.0 else z - cz
        gauss = jnp.exp(kx * (vx * vx) + ky * (vy * vy) + kz * (vz * vz))
        if Vx is None:
            Vx, Vy, Vz = gauss * vx, gauss * vy, gauss * vz
        else:
            Vx = Vx + gauss * vx
            Vy = Vy + gauss * vy
            Vz = Vz + gauss * vz

    level_set = (ft + gx * Vx + gy * Vy + gz * Vz) ** 2                   # (1, N)

    # ---- sdf constraint (only where t == initial_condition_time) --------------
    mask = t == T0
    sdf_c = jnp.where(mask, (tm_out - pred) ** 2, 0.0)                    # (1, N)

    # ---- normal constraint: 1 - cosine_similarity(grad[:3], grad_tm) ----------
    dot_ab = gx * gtx + gy * gty + gz * gtz
    na2 = gx * gx + gy * gy + gz * gz
    nb2 = gtx * gtx + gty * gty + gtz * gtz
    eps2 = jnp.float32(1e-16)   # == (1e-8)^2, matches clamp(norm, 1e-8)
    cos_sim = (dot_ab
               * lax.rsqrt(jnp.maximum(na2, eps2))
               * lax.rsqrt(jnp.maximum(nb2, eps2)))
    normal_c = jnp.where(mask, 1.0 - cos_sim, 0.0)                        # (1, N)

    # ---- three lane reductions; scale the reduced scalar, not the (1,N) row ---
    inv_n = 1.0 / n
    out_ref[0:1, :] = jnp.sum(sdf_c, axis=1, keepdims=True) * (SDF_W * inv_n)
    out_ref[1:2, :] = jnp.sum(normal_c, axis=1, keepdims=True) * (NORMAL_W * inv_n)
    out_ref[2:3, :] = jnp.sum(level_set, axis=1, keepdims=True) * (LS_W * inv_n)


# -----------------------------------------------------------------------------
# Wrapper: no per-call layout ops; inputs already in point-on-lane layout.
# -----------------------------------------------------------------------------
@jax.jit
def loss_vector_field(coords_cn, pred_cn, grad_cn, colw, roww, b2):
    """coords_cn (B,4,N), pred_cn (B,1,N), grad_cn (B,4,N); weight slabs packed
    once at init by pack_trained_model().  Returns per-batch weighted means."""
    B, _, N = coords_cn.shape

    cost = pl.CostEstimate(
        flops=int(B * (2 * 4 * HIDDEN * 2 * N + 10 * HIDDEN * N + 64 * N)),
        transcendentals=int(B * (2 * HIDDEN * N + 4 * N)),
        bytes_accessed=int(B * (9 * N + 3) * 4
                           + HIDDEN * 5 * 4 + 4 * HIDDEN * 2 + 4),
    )

    out = pl.pallas_call(
        _loss_vf_kernel,
        out_shape=jax.ShapeDtypeStruct((B, 3, 1), jnp.float32),
        grid=(B,),
        in_specs=[
            pl.BlockSpec((None, 4, N), lambda b: (b, 0, 0)),   # coords (point-on-lane)
            pl.BlockSpec((None, 1, N), lambda b: (b, 0, 0)),   # pred_sdf
            pl.BlockSpec((None, 4, N), lambda b: (b, 0, 0)),   # grad
            pl.BlockSpec((HIDDEN, 5), lambda b: (0, 0)),       # colw (static, resident)
            pl.BlockSpec((4, HIDDEN), lambda b: (0, 0)),       # roww bf16 (static)
            pl.BlockSpec((1, 1), lambda b: (0, 0)),            # b2
        ],
        out_specs=pl.BlockSpec((None, 3, 1), lambda b: (b, 0, 0)),
        compiler_params=pltpu.CompilerParams(
            dimension_semantics=("parallel",)),                # shards batches across v7x TCs
        cost_estimate=cost,
    )(coords_cn, pred_cn, grad_cn, colw, roww, b2)

    return {
        "sdf_constraint": out[:, 0, 0],
        "normal_constraint": out[:, 1, 0],
        "level_set_constraint": out[:, 2, 0],
    }


def pack_trained_model(w1, b1, w2, b2):
    """One-time packing of the static trained-model weights (NOT per-step)."""
    colw = jnp.concatenate([w1.T, b1.T, w2], axis=1).astype(jnp.float32)   # (H, 5)
    roww = jnp.concatenate([w2.T, w1], axis=0).astype(jnp.bfloat16)        # (4, H)
    return colw, roww, b2.astype(jnp.float32).reshape(1, 1)


# -----------------------------------------------------------------------------
# Plain-JAX glue + reference
# -----------------------------------------------------------------------------
def _pred_mlp(params, x4):
    """Synthetic prediction model pred_sdf = f(x,y,z,t) (stands in for the
    autograd graph that produced X['model_out'] in PyTorch)."""
    pw1, pb1, pw2, pb2 = params
    h = jnp.sin(x4 @ pw1 + pb1)
    return (h @ pw2 + pb2)[0]


def _reference_loss(coords, pred_sdf, grad, w1, b1, w2, b2):
    x3 = coords[:, :3]
    t = coords[:, 3:4]
    pre = x3 @ w1 + b1
    tm_out = jnp.sin(W0 * pre) @ w2 + b2
    grad_tm = (W0 * jnp.cos(W0 * pre) * w2.T) @ w1.T

    V = jnp.zeros_like(x3)
    for center, spread in zip(CENTERS, SPREADS):
        v = x3 - jnp.asarray(center, jnp.float32)
        gauss = jnp.exp(-jnp.sum(v * v / (2.0 * jnp.asarray(spread, jnp.float32) ** 2),
                                 axis=-1, keepdims=True))
        V = V + gauss * v
    ft = grad[:, 3:4]
    ls = (ft + jnp.sum(grad[:, :3] * V, axis=-1, keepdims=True)) ** 2

    mask = (t == T0)
    sdf_c = jnp.where(mask, (tm_out - pred_sdf) ** 2, 0.0)
    eps = 1e-8
    na = jnp.maximum(jnp.linalg.norm(grad[:, :3], axis=-1, keepdims=True), eps)
    nb = jnp.maximum(jnp.linalg.norm(grad_tm, axis=-1, keepdims=True), eps)
    cos = jnp.sum(grad[:, :3] * grad_tm, axis=-1, keepdims=True) / (na * nb)
    normal_c = jnp.where(mask, 1.0 - cos, 0.0)
    return {
        "sdf_constraint": jnp.mean(sdf_c) * SDF_W,
        "normal_constraint": jnp.mean(normal_c) * NORMAL_W,
        "level_set_constraint": jnp.mean(ls) * LS_W,
    }


if __name__ == "__main__":
    key = jax.random.PRNGKey(0)
    keys = jax.random.split(key, 10)

    # coords: (B, N, 4) = (x, y, z, t); half the points sit exactly at t == 0.
    xyz = jax.random.uniform(keys[0], (BATCH, N_POINTS, 3), jnp.float32, -1.0, 1.0)
    t_rand = jax.random.uniform(keys[1], (BATCH, N_POINTS, 1), jnp.float32, 0.1, 1.0)
    ic_mask = (jnp.arange(N_POINTS)[None, :, None] % 2) == 0
    t_col = jnp.where(ic_mask, jnp.float32(T0), t_rand)
    coords = jnp.concatenate([xyz, t_col], axis=-1)                        # (B, N, 4)

    # synthetic trained model parameters (deterministic): 3 -> HIDDEN -> 1
    w1 = jax.random.normal(keys[2], (3, HIDDEN), jnp.float32) * 0.5
    b1 = jax.random.normal(keys[3], (1, HIDDEN), jnp.float32) * 0.1
    w2 = jax.random.normal(keys[4], (HIDDEN, 1), jnp.float32) * 0.3
    b2 = jax.random.normal(keys[5], (1, 1), jnp.float32) * 0.1

    # synthetic prediction model (4 -> HIDDEN -> 1) providing pred_sdf and its
    # autograd gradient w.r.t. coords (PyTorch's `gradient(pred_sdf, coords)`).
    pw1 = jax.random.normal(keys[6], (4, HIDDEN), jnp.float32) * 0.5
    pb1 = jax.random.normal(keys[7], (HIDDEN,), jnp.float32) * 0.1
    pw2 = jax.random.normal(keys[8], (HIDDEN, 1), jnp.float32) * 0.3
    pb2 = jax.random.normal(keys[9], (1,), jnp.float32) * 0.1
    pparams = (pw1, pb1, pw2, pb2)

    pred_fn = lambda p: _pred_mlp(pparams, p)
    pred_sdf = jax.vmap(jax.vmap(pred_fn))(coords)[..., None]              # (B, N, 1)
    grad = jax.vmap(jax.vmap(jax.grad(pred_fn)))(coords)                   # (B, N, 4)

    # Upstream producer emits the point-on-lane layout consumed by the kernel.
    coords_cn = jnp.swapaxes(coords, 1, 2)                                 # (B, 4, N)
    pred_cn = jnp.swapaxes(pred_sdf, 1, 2)                                 # (B, 1, N)
    grad_cn = jnp.swapaxes(grad, 1, 2)                                     # (B, 4, N)

    # Static weight slabs packed once (not per step).
    colw, roww, b2p = pack_trained_model(w1, b1, w2, b2)

    out = loss_vector_field(coords_cn, pred_cn, grad_cn, colw, roww, b2p)
    out = jax.block_until_ready(out)

    for bi in range(BATCH):
        ref = _reference_loss(coords[bi], pred_sdf[bi], grad[bi], w1, b1, w2, b2)
        for name in ("sdf_constraint", "normal_constraint", "level_set_constraint"):
            a = float(out[name][bi])
            r = float(ref[name])
            assert abs(a - r) <= 5e-2 * max(1.0, abs(r)), (name, bi, a, r)

    print("KERNEL_OK")
</pallas_src>

<mosaic_0001>
module attributes {stable_mosaic.version = 11 : i64} {
  func.func @_loss_vf_kernel(%arg0: i32, %arg1: memref<1x4x256xf32, #tpu.memory_space<vmem>>, %arg2: memref<1x1x256xf32, #tpu.memory_space<vmem>>, %arg3: memref<1x4x256xf32, #tpu.memory_space<vmem>>, %arg4: memref<32x5xf32, #tpu.memory_space<vmem>>, %arg5: memref<4x32xbf16, #tpu.memory_space<vmem>>, %arg6: memref<1x1xf32, #tpu.memory_space<vmem>>, %arg7: memref<1x3x1xf32, #tpu.memory_space<vmem>>) attributes {dimension_semantics = [#tpu.dimension_semantics<parallel>], iteration_bounds = array<i64: 2>, scalar_prefetch = 0 : i64, scratch_operands = 0 : i64, tpu.core_type = #tpu.core_type<tc>, window_params = [{transform_indices = @transform_0, window_bounds = array<i64: 1, 4, 256>}, {transform_indices = @transform_1, window_bounds = array<i64: 1, 1, 256>}, {transform_indices = @transform_2, window_bounds = array<i64: 1, 4, 256>}, {pipeline_mode = #tpu.pipeline_mode<synchronous>, transform_indices = @transform_3, window_bounds = array<i64: 32, 5>}, {pipeline_mode = #tpu.pipeline_mode<synchronous>, transform_indices = @transform_4, window_bounds = array<i64: 4, 32>}, {pipeline_mode = #tpu.pipeline_mode<synchronous>, transform_indices = @transform_5, window_bounds = array<i64: 1, 1>}, {transform_indices = @transform_6, window_bounds = array<i64: 1, 3, 1>}]} {
    %c0 = arith.constant 0 : index
    %c0_0 = arith.constant 0 : index
    %c0_1 = arith.constant 0 : index
    %0 = vector.load %arg1[%c0, %c0_0, %c0_1] : memref<1x4x256xf32, #tpu.memory_space<vmem>>, vector<1x4x256xf32>
    %1 = vector.shape_cast %0 : vector<1x4x256xf32> to vector<4x256xf32>
    %2 = vector.extract_strided_slice %1 {offsets = [0, 0], sizes = [1, 256], strides = [1, 1]} : vector<4x256xf32> to vector<1x256xf32>
    %3 = vector.extract_strided_slice %1 {offsets = [1, 0], sizes = [1, 256], strides = [1, 1]} : vector<4x256xf32> to vector<1x256xf32>
    %4 = vector.extract_strided_slice %1 {offsets = [2, 0], sizes = [1, 256], strides = [1, 1]} : vector<4x256xf32> to vector<1x256xf32>
    %5 = vector.extract_strided_slice %1 {offsets = [3, 0], sizes = [1, 256], strides = [1, 1]} : vector<4x256xf32> to vector<1x256xf32>
    %c0_2 = arith.constant 0 : index
    %c0_3 = arith.constant 0 : index
    %c0_4 = arith.constant 0 : index
    %6 = vector.load %arg2[%c0_2, %c0_3, %c0_4] : memref<1x1x256xf32, #tpu.memory_space<vmem>>, vector<1x1x256xf32>
    %7 = vector.shape_cast %6 : vector<1x1x256xf32> to vector<1x256xf32>
    %c0_5 = arith.constant 0 : index
    %c0_6 = arith.constant 0 : index
    %c0_7 = arith.constant 0 : index
    %8 = vector.load %arg3[%c0_5, %c0_6, %c0_7] : memref<1x4x256xf32, #tpu.memory_space<vmem>>, vector<1x4x256xf32>
    %9 = vector.shape_cast %8 : vector<1x4x256xf32> to vector<4x256xf32>
    %10 = vector.extract_strided_slice %9 {offsets = [0, 0], sizes = [1, 256], strides = [1, 1]} : vector<4x256xf32> to vector<1x256xf32>
    %11 = vector.extract_strided_slice %9 {offsets = [1, 0], sizes = [1, 256], strides = [1, 1]} : vector<4x256xf32> to vector<1x256xf32>
    %12 = vector.extract_strided_slice %9 {offsets = [2, 0], sizes = [1, 256], strides = [1, 1]} : vector<4x256xf32> to vector<1x256xf32>
    %13 = vector.extract_strided_slice %9 {offsets = [3, 0], sizes = [1, 256], strides = [1, 1]} : vector<4x256xf32> to vector<1x256xf32>
    %c0_8 = arith.constant 0 : index
    %c0_9 = arith.constant 0 : index
    %14 = vector.load %arg4[%c0_8, %c0_9] : memref<32x5xf32, #tpu.memory_space<vmem>>, vector<32x1xf32>
    %c0_10 = arith.constant 0 : index
    %c1 = arith.constant 1 : index
    %15 = vector.load %arg4[%c0_10, %c1] : memref<32x5xf32, #tpu.memory_space<vmem>>, vector<32x1xf32>
    %c0_11 = arith.constant 0 : index
    %c2 = arith.constant 2 : index
    %16 = vector.load %arg4[%c0_11, %c2] : memref<32x5xf32, #tpu.memory_space<vmem>>, vector<32x1xf32>
    %c0_12 = arith.constant 0 : index
    %c3 = arith.constant 3 : index
    %17 = vector.load %arg4[%c0_12, %c3] : memref<32x5xf32, #tpu.memory_space<vmem>>, vector<32x1xf32>
    %c0_13 = arith.constant 0 : index
    %c4 = arith.constant 4 : index
    %18 = vector.load %arg4[%c0_13, %c4] : memref<32x5xf32, #tpu.memory_space<vmem>>, vector<32x1xf32>
    %19 = vector.broadcast %14 : vector<32x1xf32> to vector<32x256xf32>
    %20 = vector.broadcast %2 : vector<1x256xf32> to vector<32x256xf32>
    %21 = arith.mulf %19, %20 : vector<32x256xf32>
    %22 = vector.broadcast %15 : vector<32x1xf32> to vector<32x256xf32>
    %23 = vector.broadcast %3 : vector<1x256xf32> to vector<32x256xf32>
    %24 = arith.mulf %22, %23 : vector<32x256xf32>
    %25 = arith.addf %21, %24 : vector<32x256xf32>
    %26 = vector.broadcast %16 : vector<32x1xf32> to vector<32x256xf32>
    %27 = vector.broadcast %4 : vector<1x256xf32> to vector<32x256xf32>
    %28 = arith.mulf %26, %27 : vector<32x256xf32>
    %29 = arith.addf %25, %28 : vector<32x256xf32>
    %30 = vector.broadcast %17 : vector<32x1xf32> to vector<32x256xf32>
    %31 = arith.addf %29, %30 : vector<32x256xf32>
    %32 = math.sin %31 : vector<32x256xf32>
    %33 = arith.truncf %32 : vector<32x256xf32> to vector<32x256xbf16>
    %34 = math.cos %31 : vector<32x256xf32>
    %35 = vector.broadcast %18 : vector<32x1xf32> to vector<32x256xf32>
    %36 = arith.mulf %34, %35 : vector<32x256xf32>
    %37 = arith.truncf %36 : vector<32x256xf32> to vector<32x256xbf16>
    %38 = tpu.concatenate %33, %37 in 1 : vector<32x256xbf16>, vector<32x256xbf16> -> vector<32x512xbf16>
    %c0_14 = arith.constant 0 : index
    %c0_15 = arith.constant 0 : index
    %39 = vector.load %arg5[%c0_14, %c0_15] : memref<4x32xbf16, #tpu.memory_space<vmem>>, vector<4x32xbf16>
    %cst = arith.constant dense<0.000000e+00> : vector<4x512xf32>
    %40 = tpu.matmul %39, %38, %cst {dimension_numbers = #tpu.dot_dimension_numbers<[1], [0], [0], [1], [0, 0, 1, 1], [], []>} : vector<4x32xbf16>, vector<32x512xbf16>, vector<4x512xf32> -> vector<4x512xf32>
    %41 = vector.extract_strided_slice %40 {offsets = [0, 0], sizes = [1, 256], strides = [1, 1]} : vector<4x512xf32> to vector<1x256xf32>
    %c0_16 = arith.constant 0 : index
    %c0_17 = arith.constant 0 : index
    %42 = vector.load %arg6[%c0_16, %c0_17] : memref<1x1xf32, #tpu.memory_space<vmem>>, vector<1x1xf32>
    %43 = vector.broadcast %42 : vector<1x1xf32> to vector<1x256xf32>
    %44 = arith.addf %41, %43 : vector<1x256xf32>
    %45 = vector.extract_strided_slice %40 {offsets = [1, 256], sizes = [1, 256], strides = [1, 1]} : vector<4x512xf32> to vector<1x256xf32>
    %46 = vector.extract_strided_slice %40 {offsets = [2, 256], sizes = [1, 256], strides = [1, 1]} : vector<4x512xf32> to vector<1x256xf32>
    %47 = vector.extract_strided_slice %40 {offsets = [3, 256], sizes = [1, 256], strides = [1, 1]} : vector<4x512xf32> to vector<1x256xf32>
    %48 = arith.mulf %2, %2 : vector<1x256xf32>
    %cst_18 = arith.constant -2.000000e-02 : f32
    %49 = vector.broadcast %cst_18 : f32 to vector<1x256xf32>
    %50 = arith.mulf %49, %48 : vector<1x256xf32>
    %51 = arith.mulf %3, %3 : vector<1x256xf32>
    %cst_19 = arith.constant -2.000000e-02 : f32
    %52 = vector.broadcast %cst_19 : f32 to vector<1x256xf32>
    %53 = arith.mulf %52, %51 : vector<1x256xf32>
    %54 = arith.addf %50, %53 : vector<1x256xf32>
    %55 = arith.mulf %4, %4 : vector<1x256xf32>
    %cst_20 = arith.constant -2.000000e-02 : f32
    %56 = vector.broadcast %cst_20 : f32 to vector<1x256xf32>
    %57 = arith.mulf %56, %55 : vector<1x256xf32>
    %58 = arith.addf %54, %57 : vector<1x256xf32>
    %59 = math.exp %58 : vector<1x256xf32>
    %60 = arith.mulf %59, %2 : vector<1x256xf32>
    %61 = arith.mulf %59, %3 : vector<1x256xf32>
    %62 = arith.mulf %59, %4 : vector<1x256xf32>
    %cst_21 = arith.constant 5.000000e-01 : f32
    %63 = vector.broadcast %cst_21 : f32 to vector<1x256xf32>
    %64 = arith.subf %2, %63 : vector<1x256xf32>
    %cst_22 = arith.constant 5.000000e-01 : f32
    %65 = vector.broadcast %cst_22 : f32 to vector<1x256xf32>
    %66 = arith.subf %3, %65 : vector<1x256xf32>
    %cst_23 = arith.constant 5.000000e-01 : f32
    %67 = vector.broadcast %cst_23 : f32 to vector<1x256xf32>
    %68 = arith.subf %4, %67 : vector<1x256xf32>
    %69 = arith.mulf %64, %64 : vector<1x256xf32>
    %cst_24 = arith.constant -1.250000e-01 : f32
    %70 = vector.broadcast %cst_24 : f32 to vector<1x256xf32>
    %71 = arith.mulf %70, %69 : vector<1x256xf32>
    %72 = arith.mulf %66, %66 : vector<1x256xf32>
    %cst_25 = arith.constant -1.250000e-01 : f32
    %73 = vector.broadcast %cst_25 : f32 to vector<1x256xf32>
    %74 = arith.mulf %73, %72 : vector<1x256xf32>
    %75 = arith.addf %71, %74 : vector<1x256xf32>
    %76 = arith.mulf %68, %68 : vector<1x256xf32>
    %cst_26 = arith.constant -1.250000e-01 : f32
    %77 = vector.broadcast %cst_26 : f32 to vector<1x256xf32>
    %78 = arith.mulf %77, %76 : vector<1x256xf32>
    %79 = arith.addf %75, %78 : vector<1x256xf32>
    %80 = math.exp %79 : vector<1x256xf32>
    %81 = arith.mulf %80, %64 : vector<1x256xf32>
    %82 = arith.addf %60, %81 : vector<1x256xf32>
    %83 = arith.mulf %80, %66 : vector<1x256xf32>
    %84 = arith.addf %61, %83 : vector<1x256xf32>
    %85 = arith.mulf %80, %68 : vector<1x256xf32>
    %86 = arith.addf %62, %85 : vector<1x256xf32>
    %87 = arith.mulf %10, %82 : vector<1x256xf32>
    %88 = arith.addf %13, %87 : vector<1x256xf32>
    %89 = arith.mulf %11, %84 : vector<1x256xf32>
    %90 = arith.addf %88, %89 : vector<1x256xf32>
    %91 = arith.mulf %12, %86 : vector<1x256xf32>
    %92 = arith.addf %90, %91 : vector<1x256xf32>
    %93 = arith.mulf %92, %92 : vector<1x256xf32>
    %cst_27 = arith.constant 0.000000e+00 : f32
    %94 = vector.broadcast %cst_27 : f32 to vector<1x256xf32>
    %95 = arith.cmpf oeq, %5, %94 : vector<1x256xf32>
    %96 = arith.subf %44, %7 : vector<1x256xf32>
    %97 = arith.mulf %96, %96 : vector<1x256xf32>
    %cst_28 = arith.constant 0.000000e+00 : f32
    %98 = vector.broadcast %cst_28 : f32 to vector<1x256xf32>
    %99 = arith.select %95, %97, %98 : vector<1x256xi1>, vector<1x256xf32>
    %100 = arith.mulf %10, %45 : vector<1x256xf32>
    %101 = arith.mulf %11, %46 : vector<1x256xf32>
    %102 = arith.addf %100, %101 : vector<1x256xf32>
    %103 = arith.mulf %12, %47 : vector<1x256xf32>
    %104 = arith.addf %102, %103 : vector<1x256xf32>
    %105 = arith.mulf %10, %10 : vector<1x256xf32>
    %106 = arith.mulf %11, %11 : vector<1x256xf32>
    %107 = arith.addf %105, %106 : vector<1x256xf32>
    %108 = arith.mulf %12, %12 : vector<1x256xf32>
    %109 = arith.addf %107, %108 : vector<1x256xf32>
    %110 = arith.mulf %45, %45 : vector<1x256xf32>
    %111 = arith.mulf %46, %46 : vector<1x256xf32>
    %112 = arith.addf %110, %111 : vector<1x256xf32>
    %113 = arith.mulf %47, %47 : vector<1x256xf32>
    %114 = arith.addf %112, %113 : vector<1x256xf32>
    %cst_29 = arith.constant 1.000000e-16 : f32
    %115 = vector.broadcast %cst_29 : f32 to vector<1x256xf32>
    %116 = arith.maximumf %109, %115 : vector<1x256xf32>
    %117 = math.rsqrt %116 : vector<1x256xf32>
    %118 = arith.mulf %104, %117 : vector<1x256xf32>
    %cst_30 = arith.constant 1.000000e-16 : f32
    %119 = vector.broadcast %cst_30 : f32 to vector<1x256xf32>
    %120 = arith.maximumf %114, %119 : vector<1x256xf32>
    %121 = math.rsqrt %120 : vector<1x256xf32>
    %122 = arith.mulf %118, %121 : vector<1x256xf32>
    %cst_31 = arith.constant 1.000000e+00 : f32
    %123 = vector.broadcast %cst_31 : f32 to vector<1x256xf32>
    %124 = arith.subf %123, %122 : vector<1x256xf32>
    %cst_32 = arith.constant 0.000000e+00 : f32
    %125 = vector.broadcast %cst_32 : f32 to vector<1x256xf32>
    %126 = arith.select %95, %124, %125 : vector<1x256xi1>, vector<1x256xf32>
    %cst_33 = arith.constant dense<0.000000e+00> : vector<1xf32>
    %127 = vector.multi_reduction <add>, %99, %cst_33 [1] : vector<1x256xf32> to vector<1xf32>
    %128 = vector.shape_cast %127 : vector<1xf32> to vector<1x1xf32>
    %cst_34 = arith.constant 19.53125 : f32
    %129 = vector.broadcast %cst_34 : f32 to vector<1x1xf32>
    %130 = arith.mulf %128, %129 : vector<1x1xf32>
    %c0_35 = arith.constant 0 : index
    %c0_36 = arith.constant 0 : index
    %c0_37 = arith.constant 0 : index
    %131 = vector.load %arg7[%c0_35, %c0_36, %c0_37] : memref<1x3x1xf32, #tpu.memory_space<vmem>>, vector<1x1x1xf32>
    %132 = vector.shape_cast %131 : vector<1x1x1xf32> to vector<1x1xf32>
    %133 = vector.shape_cast %130 : vector<1x1xf32> to vector<1x1x1xf32>
    tpu.vector_store %arg7[%c0_35, %c0_36, %c0_37], %133 {strides = array<i32>} : memref<1x3x1xf32, #tpu.memory_space<vmem>>, vector<1x1x1xf32>,
    %cst_38 = arith.constant dense<0.000000e+00> : vector<1xf32>
    %134 = vector.multi_reduction <add>, %126, %cst_38 [1] : vector<1x256xf32> to vector<1xf32>
    %135 = vector.shape_cast %134 : vector<1xf32> to vector<1x1xf32>
    %cst_39 = arith.constant 1.953125 : f32
    %136 = vector.broadcast %cst_39 : f32 to vector<1x1xf32>
    %137 = arith.mulf %135, %136 : vector<1x1xf32>
    %c0_40 = arith.constant 0 : index
    %c1_41 = arith.constant 1 : index
    %c0_42 = arith.constant 0 : index
    %138 = vector.load %arg7[%c0_40, %c1_41, %c0_42] : memref<1x3x1xf32, #tpu.memory_space<vmem>>, vector<1x1x1xf32>
    %139 = vector.shape_cast %138 : vector<1x1x1xf32> to vector<1x1xf32>
    %140 = vector.shape_cast %137 : vector<1x1xf32> to vector<1x1x1xf32>
    tpu.vector_store %arg7[%c0_40, %c1_41, %c0_42], %140 {strides = array<i32>} : memref<1x3x1xf32, #tpu.memory_space<vmem>>, vector<1x1x1xf32>,
    %cst_43 = arith.constant dense<0.000000e+00> : vector<1xf32>
    %141 = vector.multi_reduction <add>, %93, %cst_43 [1] : vector<1x256xf32> to vector<1xf32>
    %142 = vector.shape_cast %141 : vector<1xf32> to vector<1x1xf32>
    %cst_44 = arith.constant 3.906250e+00 : f32
    %143 = vector.broadcast %cst_44 : f32 to vector<1x1xf32>
    %144 = arith.mulf %142, %143 : vector<1x1xf32>
    %c0_45 = arith.constant 0 : index
    %c2_46 = arith.constant 2 : index
    %c0_47 = arith.constant 0 : index
    %145 = vector.load %arg7[%c0_45, %c2_46, %c0_47] : memref<1x3x1xf32, #tpu.memory_space<vmem>>, vector<1x1x1xf32>
    %146 = vector.shape_cast %145 : vector<1x1x1xf32> to vector<1x1xf32>
    %147 = vector.shape_cast %144 : vector<1x1xf32> to vector<1x1x1xf32>
    tpu.vector_store %arg7[%c0_45, %c2_46, %c0_47], %147 {strides = array<i32>} : memref<1x3x1xf32, #tpu.memory_space<vmem>>, vector<1x1x1xf32>,
    return
  }
  func.func @transform_0(%arg0: i32) -> (i32, i32, i32) {
    %c0_i32 = arith.constant 0 : i32
    %c0_i32_0 = arith.constant 0 : i32
    %c0_i32_1 = arith.constant 0 : i32
    return %arg0, %c0_i32, %c0_i32_0 : i32, i32, i32
  }
  func.func @transform_1(%arg0: i32) -> (i32, i32, i32) {
    %c0_i32 = arith.constant 0 : i32
    %c0_i32_0 = arith.constant 0 : i32
    %c0_i32_1 = arith.constant 0 : i32
    return %arg0, %c0_i32, %c0_i32_0 : i32, i32, i32
  }
  func.func @transform_2(%arg0: i32) -> (i32, i32, i32) {
    %c0_i32 = arith.constant 0 : i32
    %c0_i32_0 = arith.constant 0 : i32
    %c0_i32_1 = arith.constant 0 : i32
    return %arg0, %c0_i32, %c0_i32_0 : i32, i32, i32
  }
  func.func @transform_3(%arg0: i32) -> (i32, i32) {
    %c0_i32 = arith.constant 0 : i32
    %c0_i32_0 = arith.constant 0 : i32
    %c0_i32_1 = arith.constant 0 : i32
    return %c0_i32, %c0_i32_0 : i32, i32
  }
  func.func @transform_4(%arg0: i32) -> (i32, i32) {
    %c0_i32 = arith.constant 0 : i32
    %c0_i32_0 = arith.constant 0 : i32
    %c0_i32_1 = arith.constant 0 : i32
    return %c0_i32, %c0_i32_0 : i32, i32
  }
  func.func @transform_5(%arg0: i32) -> (i32, i32) {
    %c0_i32 = arith.constant 0 : i32
    %c0_i32_0 = arith.constant 0 : i32
    %c0_i32_1 = arith.constant 0 : i32
    return %c0_i32, %c0_i32_0 : i32, i32
  }
  func.func @transform_6(%arg0: i32) -> (i32, i32, i32) {
    %c0_i32 = arith.constant 0 : i32
    %c0_i32_0 = arith.constant 0 : i32
    %c0_i32_1 = arith.constant 0 : i32
    return %arg0, %c0_i32, %c0_i32_0 : i32, i32, i32
  }
}

</mosaic_0001>

<bundles_post_ra>
// kernel: loss_vector_field.1
= control target key start
LH: loop header
LB: loop body
LE: loop exit
PB: predicated region body
PF: predicated region fallthrough
CT: control target
= control target key end

     0   :  { %s2802_s23 = smov 0   ;;  %s3915_s0 = inlined_call_operand.vmem [shape: f32[2,4,256], index: 0, kind: input, shape index: {}]   ;;  %s3916_s1 = inlined_call_operand.vmem [shape: f32[2,1,256], index: 1, kind: input, shape index: {}]   ;;  %s3917_s2 = inlined_call_operand.vmem [shape: f32[2,4,256], index: 2, kind: input, shape index: {}]   ;;  %s3918_s3 = inlined_call_operand.vmem [shape: f32[32,5], index: 3, kind: input, shape index: {}]   ;;  %s3919_s4 = inlined_call_operand.vmem [shape: bf16[4,32], index: 4, kind: input, shape index: {}]   ;;  %s3920_s5 = inlined_call_operand.<no memory space> [shape: f32[1,1], index: 5, kind: input, shape index: {}]   ;;  %s3921_s6 = inlined_call_operand.vmem [shape: f32[2,3,1], index: 6, kind: output, shape index: {}]  }
   0x1   :  { %v11_v0 = vstv %s3920_s5 }
   0x2   :  { %12 = vst [vmem:[#allocation2] sm:$0x1] %v11_v0 }
   0x3 LB: > { %s2542_s24 = sadd.s32 4294967295, %s2751_s23   ;;  %p2546_p0 = scmp.ge.s32.totalorder %s2751_s23, 1  ;;  %s2751_s23 = sphi %s2802_s23, %s18_s23  }
   0x4   : > { %p233_p1 = scmp.lt.s32.totalorder %s2751_s23, 3 }
   0x6   : > { %p234_p2 = pnand %p2546_p0, %p233_p1 }
   0x8   : > { %237 = sbr.rel (%p234_p2) target bundleno = 806 (0x326), region = 44 }
   0xf   : > { %v293_v1 = vld [vmem:[%s3918_s3] sm:$0xff]  ;;  %v2753_v2 = vmov 1   ;;  %v2754_v3 = vmov 0   ;;  %v294_v4 = vld [vmem:[%s3918_s3 + $0x8] sm:$0xff]  ;;  %v296_v5 = vld [vmem:[%s3918_s3 + $0x18] sm:$0xff]  ;;  %v2755_v6 = vmov 2   ;;  %v318_v10 = vlaneseq }
  0x10   : > { %2690 = vset.pattern.permute.xlu1 %v2753_v2  ;;  %2689 = vset.pattern.permute.xlu0 %v2754_v3  ;;  %v295_v7 = vld [vmem:[%s3918_s3 + $0x10] sm:$0xff]  ;;  %v2756_v8 = vmov 3   ;;  %v2757_v9 = vmov 4   ;;  %p271_p3 = scmp.lt.s32.totalorder %s2542_s24, 1 }
  0x11   : > { %345 = vperm.xlu1 %2690, %v293_v1   ;;  %299 = vperm.xlu0 %2689, %v293_v1   ;;  %v2829_v11 = vshrl.u32 %v318_v10, 7 }
  0x12   : > { %2234 = vmatprep.mubr.bf16.mxu1 %v2754_v3  ;;  %2193 = vmatprep.mubr.bf16.mxu0 %v2754_v3  ;;  %s4054_s24 = smov (!%p271_p3, %s2542_s24), 1 }
  0x13   : > { %s2636_s8 = sshll.u32 %s4054_s24, 3  ;;  %3972 = vst [vmem:[#allocation3_spill] sm:$0xff] %v2829_v11  ;;  %v2839_v14 = vsub.s32 1, %v2829_v11  ;;  %v366_v15 = vsub.s32 5, %v2829_v11  ;;  %v2844_v18 = vsub.s32 0, %v2829_v11  ;;  %v324_v19 = vsub.s32 4, %v2829_v11 }
  0x14   : > { %s2836_s11 = scalar_lea.vmem %s3915_s0, %s2636_s8  ;;  %v412_v20 = vsub.s32 2, %v2829_v11  ;;  %v416_v21 = vsub.s32 6, %v2829_v11  ;;  %s284_s16 = scalar_lea.vmem %s3917_s2, %s2636_s8 }
  0x15   : > { %349 = vperm.xlu1 %2690, %v294_v4   ;;  %304 = vperm.xlu0 %2689, %v294_v4   ;;  %3973 = vst [vmem:[#allocation4_spill] sm:$0xff] %v2839_v14  ;;  %v290_v17 = vld [vmem:[%s2836_s11] sm:$0xff]  ;;  %3974 = vst [vmem:[#allocation5_spill] sm:$0xff] %v2844_v18  ;;  %s2549_s17 = sshll.u32 %s4054_s24, 1  ;;  %s2552_s21 = sshll.u32 %s4054_s24, 2 }
  0x16   : > { %v363_v23 = vrot.slane %v290_v17, %v2839_v14  ;;  %v367_v24 = vrot.slane %v290_v17, %v366_v15  ;;  %v321_v26 = vrot.slane %v290_v17, %v2844_v18  ;;  %v325_v27 = vrot.slane %v290_v17, %v324_v19  ;;  %s279_s20 = scalar_lea.vmem %s3916_s1, %s2549_s17  ;;  %s288_s26 = scalar_lea.vmem %s3921_s6, %s2552_s21 }
  0x17   : > { %v413_v28 = vrot.slane %v290_v17, %v412_v20  ;;  %v417_v29 = vrot.slane %v290_v17, %v416_v21 }
  0x18   : > { %v2854_v30 = vrot.slane %v363_v23, %v2839_v14  ;;  %v2857_v31 = vrot.slane %v367_v24, %v2839_v14  ;;  %v331_v33 = vrot.slane %v321_v26, %v2844_v18  ;;  %v2861_v34 = vrot.slane %v325_v27, %v2844_v18 }
  0x19   : > { %2691 = vset.pattern.permute.xlu1 %v2755_v6  ;;  %314 = vperm.xlu0 %2689, %v296_v5   ;;  %v2863_v35 = vrot.slane %v413_v28, %v412_v20  ;;  %v2865_v36 = vrot.slane %v417_v29, %v412_v20  ;;  %v3942_v24 = vmov 683565275   ;;  %v3931_v27 = vmov 2475754826  }
  0x1a   : > { %399 = vperm.xlu1 %2691, %v294_v4  }
  0x1d   : > { %2693 = vset.pattern.permute.xlu0 %v2755_v6 }
  0x1e   : > { %2692 = vset.pattern.permute.xlu1 %v2754_v3  ;;  %395 = vperm.xlu0 %2693, %v293_v1  }
  0x1f   : > { %309 = vperm.xlu1 %2692, %v295_v7  }
  0x22   : > { %403 = vperm.xlu0 %2693, %v295_v7  }
  0x23   : > { %2694 = vset.pattern.permute.xlu1 %v2753_v2 }
  0x24   : > { %353 = vperm.xlu1 %2694, %v295_v7  }
  0x26   : > { %2697 = vset.pattern.permute.xlu0 %v2756_v8 }
  0x27   : > { %449 = vperm.xlu0 %2697, %v294_v4  }
  0x28   : > { %357 = vperm.xlu1 %2694, %v296_v5  }
  0x2b   : > { %2698 = vset.pattern.permute.xlu0 %v2757_v9 }
  0x2c   : > { %2695 = vset.pattern.permute.xlu1 %v2755_v6  ;;  %2129 = vperm.xlu0 %2698, %v293_v1  }
  0x2d   : > { %407 = vperm.xlu1 %2695, %v296_v5  }
  0x30   : > { %2141 = vperm.xlu0 %2698, %v296_v5  }
  0x31   : > { %2696 = vset.pattern.permute.xlu1 %v2756_v8 }
  0x32   : > { %445 = vperm.xlu1 %2696, %v293_v1  }
  0x34   : > { %2701 = vset.pattern.permute.xlu0 %v2754_v3 }
  0x36   : > { %453 = vperm.xlu1 %2696, %v295_v7  }
  0x3a   : > { %457 = vperm.xlu1 %2696, %v296_v5  }
  0x3e   : > { %2699 = vset.pattern.permute.xlu1 %v2757_v9 }
  0x3f   : > { %2133 = vperm.xlu1 %2699, %v294_v4  }
  0x43   : > { %2137 = vperm.xlu1 %2699, %v295_v7  }
  0x47   : > { %2700 = vset.pattern.permute.xlu1 %v2754_v3 }
  0x90   : > { %v346_v12 = vpop.permute.xlu1 %345  ;;  %v300_v13 = vpop.permute.xlu0 %299 }
  0x91   : > { %v378_v59 = vmul.f32 %v2854_v30, %v346_v12  ;;  %v336_v60 = vmul.f32 %v331_v33, %v300_v13  ;;  %v379_v63 = vmul.f32 %v2857_v31, %v346_v12  ;;  %v337_v0 = vmul.f32 %v2861_v34, %v300_v13 }
  0x93   : > { %v386_v4 = vadd.f32 %v378_v59, %v336_v60  ;;  %v387_v7 = vadd.f32 %v379_v63, %v337_v0 }
  0x94   : > { %v305_v16 = vpop.permute.xlu0 %304  ;;  %v350_v22 = vpop.permute.xlu1 %349 }
  0x95   : > { %v380_v38 = vmul.f32 %v2854_v30, %v350_v22  ;;  %v381_v39 = vmul.f32 %v2857_v31, %v350_v22  ;;  %v338_v40 = vmul.f32 %v331_v33, %v305_v16  ;;  %v339_v41 = vmul.f32 %v2861_v34, %v305_v16 }
  0x97   : > { %v388_v46 = vadd.f32 %v380_v38, %v338_v40  ;;  %v389_v47 = vadd.f32 %v381_v39, %v339_v41  ;;  %v3927_v39 = vmov 2102212464  }
  0x98   : > { %v2850_v25 = vpop.permute.xlu0 %314 }
  0x99   : > { %v400_v32 = vpop.permute.xlu1 %399  ;;  %v2890_v8 = vmul.f32 %v331_v33, %v2850_v25 }
  0x9a   : > { %v430_v42 = vmul.f32 %v2863_v35, %v400_v32  ;;  %v431_v43 = vmul.f32 %v2865_v36, %v400_v32 }
  0x9c   : > { %v438_v48 = vadd.f32 %v430_v42, %v388_v46  ;;  %v439_v49 = vadd.f32 %v431_v43, %v389_v47  ;;  %v3935_v42 = vmov 920167782   ;;  %v3925_v46 = vmov 1326507024  }
  0x9d   : > { %v396_v37 = vpop.permute.xlu0 %395 }
  0x9e   : > { %v310_v45 = vpop.permute.xlu1 %309  ;;  %v428_v2 = vmul.f32 %v2863_v35, %v396_v37  ;;  %v429_v9 = vmul.f32 %v2865_v36, %v396_v37 }
  0x9f   : > { %v340_v12 = vmul.f32 %v331_v33, %v310_v45  ;;  %v2894_v13 = vmul.f32 %v2861_v34, %v310_v45  ;;  %v3933_v33 = vmov 2131351028  }
  0xa0   : > { %v436_v17 = vadd.f32 %v428_v2, %v386_v4 }
  0xa1   : > { %v2872_v44 = vpop.permute.xlu0 %403 }
  0xa3   : > { %v354_v53 = vpop.permute.xlu1 %353 }
  0xa4   : > { %v382_v15 = vmul.f32 %v2854_v30, %v354_v53  ;;  %v383_v19 = vmul.f32 %v2857_v31, %v354_v53 }
  0xa6   : > { %v450_v50 = vpop.permute.xlu0 %449 }
  0xa7   : > { %v2874_v51 = vadd.f32 %v450_v50, %v438_v48  ;;  %v2876_v52 = vadd.f32 %v450_v50, %v439_v49  ;;  %v2882_v62 = vpop.permute.xlu1 %357 }
  0xa9   : > { %3975 = vst [vmem:[#allocation6_spill] sm:$0xff] %v2876_v52  ;;  %v679_v54 = vand.u32 2139095040, %v2874_v51  ;;  %v783_v55 = vand.u32 2139095040, %v2876_v52  ;;  %v3924_v57 = vand.u32 2147483647, %v2874_v51 }
  0xaa   : > { %v3922_v22 = vand.u32 2147483647, %v2876_v52 }
  0xab   : > { %v680_v56 = vshrl.u32 %v679_v54, 23  ;;  %v784_v61 = vshrl.u32 %v783_v55, 23  ;;  %v683_v3 = vand.u32 8388607, %v3924_v57 }
  0xac   : > { %v2897_v16 = vpop.permute.xlu1 %407 }
  0xad   : > { %v2561_v58 = vadd.s32 4294967169, %v680_v56  ;;  %v2565_v6 = vadd.s32 4294967169, %v784_v61  ;;  %v684_v20 = vor.u32 8388608, %v683_v3 }
  0xaf   : > { %v686_v1 = vadd.s32 1, %v2561_v58  ;;  %v790_v29 = vadd.s32 1, %v2565_v6  ;;  %v724_v53 = vshll.u32 %v684_v20, 8 }
  0xb1   : > { %vm687_vm0 = vcmp.gt.s32.totalorder %v686_v1, 0  ;;  %v446_v56 = vpop.permute.xlu1 %445  ;;  %vm791_vm3 = vcmp.gt.s32.totalorder %v790_v29, 0 }
  0xb2   : > { %v688_v5 = vsel %vm687_vm0, %v686_v1, 0  ;;  %v2912_v3 = vadd.f32 %v446_v56, %v436_v17  ;;  %v787_v17 = vand.u32 8388607, %v3922_v22 }
  0xb3   : > { %v690_v10 = vand.u32 31, %v688_v5  ;;  %v689_v23 = vshrl.u32 %v688_v5, 5 }
  0xb5   : > { %v691_v21 = vsub.s32 32, %v690_v10  ;;  %v693_v26 = vshll.u32 %v3942_v24, %v690_v10  ;;  %v696_v28 = vshll.u32 %v3931_v27, %v690_v10  ;;  %v699_v38 = vshll.u32 %v3933_v33, %v690_v10 }
  0xb6   : > { %v702_v41 = vshll.u32 %v3927_v39, %v690_v10  ;;  %v705_v45 = vshll.u32 %v3935_v42, %v690_v10  ;;  %vm708_vm1 = vcmp.lt.s32.totalorder %v689_v23, 1  ;;  %vm711_vm2 = vcmp.lt.s32.totalorder %v689_v23, 4 }
  0xb7   : > { %v694_v32 = vshrl.u32 %v3931_v27, %v691_v21  ;;  %v697_v37 = vshrl.u32 %v3933_v33, %v691_v21  ;;  %v700_v40 = vshrl.u32 %v3927_v39, %v691_v21  ;;  %v703_v43 = vshrl.u32 %v3935_v42, %v691_v21 }
  0xb8   : > { %v706_v47 = vshrl.u32 %v3925_v46, %v691_v21  ;;  %v692_v61 = vshrl.u32 %v3942_v24, %v691_v21  ;;  %vm710_vm4 = vcmp.lt.s32.totalorder %v689_v23, 3  ;;  %vm709_vm5 = vcmp.lt.s32.totalorder %v689_v23, 2 }
  0xb9   : > { %v695_v48 = vor.u32 %v694_v32, %v693_v26  ;;  %v698_v49 = vor.u32 %v697_v37, %v696_v28  ;;  %v701_v50 = vor.u32 %v700_v40, %v699_v38  ;;  %v704_v54 = vor.u32 %v703_v43, %v702_v41 }
  0xba   : > { %v707_v55 = vor.u32 %v706_v47, %v705_v45  ;;  %v432_v21 = vmul.f32 %v2863_v35, %v2872_v44  ;;  %v792_v37 = vsel %vm791_vm3, %v790_v29, 0  ;;  %v437_v38 = vadd.f32 %v429_v9, %v387_v7 }
  0xbb   : > { %v713_v58 = vsel %vm711_vm2, %v701_v50, 2102212464  ;;  %v716_v59 = vsel %vm708_vm1, %v695_v48, %v698_v49  ;;  %v720_v60 = vsel %vm708_vm1, %v698_v49, %v701_v50  ;;  %v717_v63 = vsel %vm711_vm2, %v704_v54, 920167782 }
  0xbc   : > { %v721_v0 = vsel %vm711_vm2, %v707_v55, 1326507024  ;;  %v718_v1 = vsel %vm710_vm4, %v701_v50, %v717_v63  ;;  %v712_v4 = vsel %vm708_vm1, %v692_v61, %v695_v48  ;;  %v714_v5 = vsel %vm710_vm4, %v698_v49, %v713_v58  ;;  %v2965_v58 = vpop.permute.xlu1 %453 }
  0xbd   : > { %v722_v2 = vsel %vm710_vm4, %v704_v54, %v721_v0  ;;  %v719_v6 = vsel %vm709_vm5, %v716_v59, %v718_v1  ;;  %v433_v40 = vmul.f32 %v2865_v36, %v2872_v44  ;;  %v390_v41 = vadd.f32 %v382_v15, %v340_v12 }
  0xbe   : > { %v723_v10 = vsel %vm709_vm5, %v720_v60, %v722_v2  ;;  %v2919_v28 = vmul.u32.u64.low %v724_v53, %v719_v6  ;;  %v2920_v32 = vmul.u32.u64.high %v724_v53, %v719_v6, %v2919_v28  ;;  %v715_v43 = vsel %vm709_vm5, %v712_v4, %v714_v5 }
  0xbf   : > { %v2916_v20 = vmul.u32.u64.low %v724_v53, %v723_v10  ;;  %v2917_v26 = vmul.u32.u64.high %v724_v53, %v723_v10, %v2916_v20  ;;  %v3923_v45 = vand.u32 2147483647, %v2912_v3  ;;  %v391_v47 = vadd.f32 %v383_v19, %v2894_v13 }
  0xc0   : > { %v384_v48 = vmul.f32 %v2854_v30, %v2882_v62  ;;  %v385_v49 = vmul.f32 %v2857_v31, %v2882_v62  ;;  %v471_v50 = vand.u32 2139095040, %v2912_v3  ;;  %v734_v44 = vadd.s32 1, %v2920_v32 }
  0xc1   : > { %vm733_vm6 = vc.u32 %v2917_v26, %v2919_v28  ;;  %v2941_v7 = vand.u32 31, %v792_v37  ;;  %v2943_v9 = vadd.f32 %v446_v56, %v437_v38  ;;  %v731_v12 = vmul.u32 %v724_v53, %v715_v43 }
  0xc2   : > { %v788_v15 = vor.u32 8388608, %v787_v17  ;;  %v434_v13 = vmul.f32 %v2863_v35, %v2897_v16  ;;  %v472_v30 = vshrl.u32 %v471_v50, 23  ;;  %v343_v31 = vmul.f32 %v2861_v34, %v2850_v25 }
  0xc3   : > { %3976 = vst [vmem:[#allocation7_spill] sm:$0xff] %v2943_v9  ;;  %v735_v62 = vsel %vm733_vm6, %v734_v44, %v2920_v32  ;;  %v475_v19 = vand.u32 8388607, %v3923_v45  ;;  %v440_v23 = vadd.f32 %v432_v21, %v390_v41  ;;  %v392_v54 = vadd.f32 %v384_v48, %v2890_v8 }
  0xc4   : > { %v736_v29 = vadd.s32 %v735_v62, %v731_v12  ;;  %v2553_v55 = vadd.s32 4294967169, %v472_v30  ;;  %v2953_v56 = vadd.f32 %v433_v40, %v391_v47  ;;  %v2956_v53 = vsub.s32 32, %v2941_v7 }
  0xc5   : > { %v2958_v35 = vadd.f32 %v385_v49, %v343_v31  ;;  %v2962_v25 = vmul.f32 %v2865_v36, %v2897_v16  ;;  %v575_v34 = vand.u32 2139095040, %v2943_v9  ;;  %v2967_v60 = vshll.u32 %v788_v15, 8 }
  0xc6   : > { %v737_v59 = vadd.s32 536870912, %v736_v29  ;;  %v478_v8 = vadd.s32 1, %v2553_v55  ;;  %v2969_v61 = vadd.f32 %v434_v13, %v392_v54  ;;  %v2971_v63 = vshrl.u32 %v792_v37, 5 }
  0xc7   : > { %v2975_v0 = vshll.u32 %v3931_v27, %v2941_v7  ;;  %v476_v1 = vor.u32 8388608, %v475_v19  ;;  %v576_v2 = vshrl.u32 %v575_v34, 23  ;;  %v2981_v16 = vshll.u32 %v3933_v33, %v2941_v7 }
  0xc8   : > { %v2977_v36 = vshrl.u32 %v737_v59, 30  ;;  %vm479_vm7 = vcmp.gt.s32.totalorder %v478_v8, 0  ;;  %v2984_v4 = vadd.f32 %v2965_v58, %v440_v23  ;;  %v801_v5 = vshrl.u32 %v3933_v33, %v2956_v53 }
  0xc9   : > { %v2990_v6 = vshrl.u32 %v3927_v39, %v2956_v53  ;;  %v480_v10 = vsel %vm479_vm7, %v478_v8, 0  ;;  %v2557_v20 = vadd.s32 4294967169, %v576_v2  ;;  %v806_v21 = vshll.u32 %v3927_v39, %v2941_v7 }
  0xca   : > { %3977 = vst [vmem:[#allocation8_spill] sm:$0xff] %v2984_v4  ;;  %v739_v32 = vshll.u32 %v2977_v36, 30  ;;  %v807_v17 = vshrl.u32 %v3935_v42, %v2956_v53  ;;  %v482_v37 = vand.u32 31, %v480_v10  ;;  %v2999_v38 = vshll.u32 %v3935_v42, %v2941_v7 }
  0xcb   : > { %v3003_v40 = vshrl.u32 %v3925_v46, %v2956_v53  ;;  %v3005_v41 = vshll.u32 %v476_v1, 8  ;;  %v3929_v43 = vand.u32 2147483647, %v2943_v9  ;;  %v481_v48 = vshrl.u32 %v480_v10, 5 }
  0xcc   : > { %v3008_v47 = vsub.s32 %v736_v29, %v739_v32  ;;  %v483_v49 = vsub.s32 32, %v482_v37  ;;  %v887_v50 = vand.u32 2139095040, %v2984_v4  ;;  %v485_v44 = vshll.u32 %v3942_v24, %v482_v37 }
  0xcd   : > { %v488_v12 = vshll.u32 %v3931_v27, %v482_v37  ;;  %v491_v15 = vshll.u32 %v3933_v33, %v482_v37  ;;  %v582_v13 = vadd.s32 1, %v2557_v20  ;;  %v494_v19 = vshll.u32 %v3927_v39, %v482_v37 }
  0xce   : > { %v742_v30 = vsub.s32 0, %v3008_v47  ;;  %v486_v31 = vshrl.u32 %v3931_v27, %v483_v49  ;;  %v489_v62 = vshrl.u32 %v3933_v33, %v483_v49  ;;  %v492_v23 = vshrl.u32 %v3927_v39, %v483_v49 }
  0xcf   : > { %v495_v29 = vshrl.u32 %v3935_v42, %v483_v49  ;;  %v497_v54 = vshll.u32 %v3935_v42, %v482_v37  ;;  %v498_v55 = vshrl.u32 %v3925_v46, %v483_v49  ;;  %vm500_vm8 = vcmp.lt.s32.totalorder %v481_v48, 1 }
  0xd0   : > { %v2562_v34 = vmin.u32 %v742_v30, %v3008_v47  ;;  %v487_v59 = vor.u32 %v486_v31, %v485_v44  ;;  %v490_v8 = vor.u32 %v489_v62, %v488_v12  ;;  %v484_v1 = vshrl.u32 %v3942_v24, %v483_v49 }
  0xd1   : > { %v493_v2 = vor.u32 %v492_v23, %v491_v15  ;;  %v496_v10 = vor.u32 %v495_v29, %v494_v19  ;;  %v499_v20 = vor.u32 %v498_v55, %v497_v54  ;;  %vm502_vm9 = vcmp.lt.s32.totalorder %v481_v48, 3 }
  0xd2   : > { %v744_v32 = vclz %v2562_v34  ;;  %vm503_vm10 = vcmp.lt.s32.totalorder %v481_v48, 4  ;;  %v508_v22 = vsel %vm500_vm8, %v487_v59, %v490_v8  ;;  %vm501_vm11 = vcmp.lt.s32.totalorder %v481_v48, 2 }
  0xd3   : > { %v505_v45 = vsel %vm503_vm10, %v493_v2, 2102212464  ;;  %v509_v57 = vsel %vm503_vm10, %v496_v10, 920167782  ;;  %v512_v37 = vsel %vm500_vm8, %v490_v8, %v493_v2  ;;  %v513_v46 = vsel %vm503_vm10, %v499_v20, 1326507024 }
  0xd4   : > { %v2563_v39 = vadd.s32 4294967294, %v744_v32  ;;  %v510_v44 = vsel %vm502_vm9, %v493_v2, %v509_v57  ;;  %v514_v12 = vsel %vm502_vm9, %v496_v10, %v513_v46  ;;  %v504_v49 = vsel %vm500_vm8, %v484_v1, %v487_v59 }
  0xd5   : > { %v511_v15 = vsel %vm501_vm11, %v508_v22, %v510_v44  ;;  %v515_v30 = vsel %vm501_vm11, %v512_v37, %v514_v12  ;;  %v888_v31 = vshrl.u32 %v887_v50, 23  ;;  %v506_v62 = vsel %vm502_vm9, %v490_v8, %v505_v45 }
  0xd6   : > { %vm2564_vm12 = vcmp.lt.s32.totalorder %v2563_v39, 0  ;;  %v3033_v19 = vmul.u32.u64.low %v3005_v41, %v515_v30  ;;  %v3034_v23 = vmul.u32.u64.high %v3005_v41, %v515_v30, %v3033_v19  ;;  %vm583_vm13 = vcmp.gt.s32.totalorder %v582_v13, 0 }
  0xd7   : > { %v747_v29 = vsel %vm2564_vm12, 0, %v2563_v39  ;;  %v3037_v54 = vmul.u32.u64.low %v3005_v41, %v511_v15  ;;  %v3038_v57 = vmul.u32.u64.high %v3005_v41, %v511_v15, %v3037_v54  ;;  %v3041_v46 = vor.u32 %v801_v5, %v2975_v0 }
  0xd8   : > { %v808_v22 = vor.u32 %v807_v17, %v806_v21  ;;  %v811_v50 = vor.u32 %v3003_v40, %v2999_v38  ;;  %v443_v45 = vadd.f32 %v2962_v25, %v2958_v35  ;;  %v752_v55 = vsub.s32 4294967266, %v747_v29 }
  0xd9   : > { %v3049_v34 = vor.u32 %v2990_v6, %v2981_v16  ;;  %v507_v39 = vsel %vm501_vm11, %v504_v49, %v506_v62  ;;  %v3054_v59 = vadd.f32 %v2965_v58, %v2953_v56  ;;  %vm812_vm14 = vcmp.lt.s32.totalorder %v2971_v63, 1 }
  0xda   : > { %vm525_vm15 = vc.u32 %v3034_v23, %v3037_v54  ;;  %v584_v0 = vsel %vm583_vm13, %v582_v13, 0  ;;  %v3930_v5 = vand.u32 2147483647, %v2984_v4  ;;  %vm815_vm0 = vcmp.lt.s32.totalorder %v2971_v63, 4  ;;  %v458_v13 = vpop.permute.xlu1 %457 }
  0xdb   : > { %3978 = vst [vmem:[#allocation9_spill] sm:$0xff] %v3054_v59  ;;  %v526_v35 = vadd.s32 1, %v3038_v57  ;;  %v579_v25 = vand.u32 8388607, %v3929_v43  ;;  %v2569_v16 = vadd.s32 4294967169, %v888_v31  ;;  %v748_v6 = vsub.s32 32, %v747_v29 }
  0xdc   : > { %v821_v56 = vsel %vm815_vm0, %v808_v22, 920167782  ;;  %v825_v58 = vsel %vm815_vm0, %v811_v50, 1326507024  ;;  %v523_v21 = vmul.u32 %v3005_v41, %v507_v39  ;;  %v753_v17 = vadd.s32 127, %v752_v55 }
  0xdd   : > { %v527_v38 = vsel %vm525_vm15, %v526_v35, %v3038_v57  ;;  %v3069_v40 = vand.u32 31, %v584_v0  ;;  %v991_v48 = vand.u32 2139095040, %v3054_v59  ;;  %v732_v8 = vadd.s32 %v2919_v28, %v2917_v26 }
  0xde   : > { %vm814_vm1 = vcmp.lt.s32.totalorder %v2971_v63, 3  ;;  %v528_v1 = vadd.s32 %v527_v38, %v523_v21  ;;  %v891_v2 = vand.u32 8388607, %v3930_v5  ;;  %v3086_v10 = vsel %vm812_vm14, %v3041_v46, %v3049_v34 }
  0xdf   : > { %v3080_v41 = vsel %vm814_vm1, %v3049_v34, %v821_v56  ;;  %v580_v20 = vor.u32 8388608, %v579_v25  ;;  %v894_v32 = vadd.s32 1, %v2569_v16  ;;  %v750_v26 = vshrl.u32 %v732_v8, %v748_v6 }
  0xe0   : > { %v3090_v28 = vsel %vm814_vm1, %v808_v22, %v825_v58  ;;  %v529_v37 = vadd.s32 536870912, %v528_v1  ;;  %v3093_v44 = vadd.f32 %v458_v13, %v2969_v61  ;;  %v754_v12 = vshll.u32 %v753_v17, 23 }
  0xe1   : > { %v3096_v49 = vsub.s32 32, %v3069_v40  ;;  %vm895_vm2 = vcmp.gt.s32.totalorder %v894_v32, 0  ;;  %v992_v15 = vshrl.u32 %v991_v48, 23  ;;  %v892_v31 = vor.u32 8388608, %v891_v2 }
  0xe2   : > { %3979 = vst [vmem:[#allocation10_spill] sm:$0xff] %v3093_v44  ;;  %v3098_v30 = vshrl.u32 %v529_v37, 30  ;;  %v3101_v19 = vadd.f32 %v458_v13, %v443_v45  ;;  %v749_v57 = vshll.u32 %v3008_v47, %v747_v29  ;;  %v3104_v22 = vshll.u32 %v580_v20, 8 }
  0xe3   : > { %3980 = vst [vmem:[#allocation11_spill] sm:$0xff] %v3096_v49  ;;  %v896_v50 = vsel %vm895_vm2, %v894_v32, 0  ;;  %v2573_v61 = vadd.s32 4294967169, %v992_v15  ;;  %v3107_v55 = vadd.s32 %v3037_v54, %v3034_v23  ;;  %v3110_v35 = vshrl.u32 %v584_v0, 5 }
  0xe4   : > { %3981 = vst [vmem:[#allocation12_spill] sm:$0xff] %v3098_v30  ;;  %3982 = vst [vmem:[#allocation13_spill] sm:$0xff] %v3101_v19  ;;  %v531_v39 = vshll.u32 %v3098_v30, 30  ;;  %v898_v25 = vand.u32 31, %v896_v50  ;;  %v3112_v16 = vor.u32 %v750_v26, %v749_v57  ;;  %v3114_v6 = vor.u32 4788187, %v754_v12 }
  0xe5   : > { %3983 = vst [vmem:[#allocation14_spill] sm:$0xff] %v3104_v22  ;;  %v3118_v45 = vshll.u32 %v3931_v27, %v3069_v40  ;;  %v599_v47 = vshrl.u32 %v3935_v42, %v3096_v49  ;;  %v897_v23 = vshrl.u32 %v896_v50, 5  ;;  %v3124_v56 = vshll.u32 %v892_v31, 8 }
  0xe6   : > { %v3122_v29 = vsub.s32 %v528_v1, %v531_v39  ;;  %v899_v54 = vsub.s32 32, %v898_v25  ;;  %v901_v0 = vshll.u32 %v3942_v24, %v898_v25  ;;  %v904_v58 = vshll.u32 %v3931_v27, %v898_v25 }
  0xe7   : > { %v907_v21 = vshll.u32 %v3933_v33, %v898_v25  ;;  %v998_v17 = vadd.s32 1, %v2573_v61  ;;  %v3984_v8 = vmov 2102212464   ;;  %v913_v32 = vshll.u32 %v3935_v42, %v898_v25 }
  0xe8   : > { %v534_v38 = vsub.s32 0, %v3122_v29  ;;  %v902_v48 = vshrl.u32 %v3931_v27, %v899_v54  ;;  %v905_v13 = vshrl.u32 %v3933_v33, %v899_v54  ;;  %v910_v1 = vshll.u32 %v3984_v8, %v898_v25 }
  0xe9   : > { %v908_v2 = vshrl.u32 %v3984_v8, %v899_v54  ;;  %v911_v20 = vshrl.u32 %v3935_v42, %v899_v54  ;;  %v3985_v26 = vmov 1326507024   ;;  %v900_v15 = vshrl.u32 %v3942_v24, %v899_v54 }
  0xea   : > { %v914_v37 = vshrl.u32 %v3985_v26, %v899_v54  ;;  %v2554_v12 = vmin.u32 %v534_v38, %v3122_v29  ;;  %v903_v31 = vor.u32 %v902_v48, %v901_v0  ;;  %v906_v57 = vor.u32 %v905_v13, %v904_v58 }
  0xeb   : > { %v909_v50 = vor.u32 %v908_v2, %v907_v21  ;;  %v912_v61 = vor.u32 %v911_v20, %v910_v1  ;;  %vm916_vm3 = vcmp.lt.s32.totalorder %v897_v23, 1  ;;  %vm918_vm4 = vcmp.lt.s32.totalorder %v897_v23, 3 }
  0xec   : > { %v915_v39 = vor.u32 %v914_v37, %v913_v32  ;;  %v536_v43 = vclz %v2554_v12  ;;  %vm919_vm5 = vcmp.lt.s32.totalorder %v897_v23, 4  ;;  %v924_v5 = vsel %vm916_vm3, %v903_v31, %v906_v57 }
  0xed   : > { %v921_v27 = vsel %vm919_vm5, %v909_v50, 2102212464  ;;  %v925_v33 = vsel %vm919_vm5, %v912_v61, 920167782  ;;  %v928_v62 = vsel %vm916_vm3, %v906_v57, %v909_v50  ;;  %vm917_vm6 = vcmp.lt.s32.totalorder %v897_v23, 2 }
  0xee   : > { %v929_v25 = vsel %vm919_vm5, %v915_v39, 1326507024  ;;  %v2555_v42 = vadd.s32 4294967294, %v536_v43  ;;  %v926_v38 = vsel %vm918_vm4, %v909_v50, %v925_v33  ;;  %v920_v0 = vsel %vm916_vm3, %v900_v15, %v903_v31 }
  0xef   : > { %v930_v54 = vsel %vm918_vm4, %v912_v61, %v929_v25  ;;  %v927_v58 = vsel %vm917_vm6, %v924_v5, %v926_v38  ;;  %vm999_vm7 = vcmp.gt.s32.totalorder %v998_v17, 0  ;;  %v922_v48 = vsel %vm918_vm4, %v906_v57, %v921_v27 }
  0xf0   : > { %v931_v21 = vsel %vm917_vm6, %v928_v62, %v930_v54  ;;  %vm2556_vm8 = vcmp.lt.s32.totalorder %v2555_v42, 0  ;;  %v3149_v43 = vmul.u32.u64.low %v3124_v56, %v927_v58  ;;  %v3150_v2 = vmul.u32.u64.high %v3124_v56, %v927_v58, %v3149_v43 }
  0xf1   : > { %v3145_v13 = vmul.u32.u64.low %v3124_v56, %v931_v21  ;;  %v3146_v1 = vmul.u32.u64.high %v3124_v56, %v931_v21, %v3145_v13  ;;  %v3986_v33 = vand.u32 2147483647, %v3054_v59  ;;  %v1000_v32 = vsel %vm999_vm7, %v998_v17, 0 }
  0xf2   : > { %v3987_v5 = vmov 2131351028   ;;  %v598_v37 = vshll.u32 %v3984_v8, %v3069_v40  ;;  %v3988_v12 = vmov 920167782   ;;  %v3169_v31 = vsel %vm2556_vm8, 0, %v2555_v42 }
  0xf3   : > { %v995_v20 = vand.u32 8388607, %v3986_v33  ;;  %v3157_v62 = vshrl.u32 %v3987_v5, %v3096_v49  ;;  %v3161_v27 = vshll.u32 %v3987_v5, %v3069_v40  ;;  %v3167_v15 = vshll.u32 %v3988_v12, %v3069_v40 }
  0xf4   : > { %v3173_v17 = vshrl.u32 %v3984_v8, %v3096_v49  ;;  %v923_v57 = vsel %vm917_vm6, %v920_v0, %v922_v48  ;;  %v1002_v50 = vand.u32 31, %v1000_v32  ;;  %v758_v61 = vcvt.s32.f32 %v3112_v16 }
  0xf5   : > { %v3177_v39 = vor.u32 %v599_v47, %v598_v37  ;;  %v3181_v25 = vshrl.u32 %v3985_v26, %v3096_v49  ;;  %vm941_vm9 = vc.u32 %v3146_v1, %v3149_v43  ;;  %v756_v42 = vand.u32 2147483647, %v3114_v6 }
  0xf6   : > { %v942_v38 = vadd.s32 1, %v3150_v2  ;;  %v996_v54 = vor.u32 8388608, %v995_v20  ;;  %v1003_v58 = vsub.s32 32, %v1002_v50  ;;  %v540_v23 = vsub.s32 32, %v3169_v31 }
  0xf7   : > { %v939_v0 = vmul.u32 %v3124_v56, %v923_v57  ;;  %v1005_v16 = vshll.u32 %v3942_v24, %v1002_v50  ;;  %v3989_v48 = vmov 2475754826   ;;  %v1001_v11 = vshrl.u32 %v1000_v32, 5 }
  0xf8   : > { %v943_v21 = vsel %vm941_vm9, %v942_v38, %v3150_v2  ;;  %v1006_v13 = vshrl.u32 %v3989_v48, %v1003_v58  ;;  %v1008_v33 = vshll.u32 %v3989_v48, %v1002_v50  ;;  %v1009_v6 = vshrl.u32 %v3987_v5, %v1003_v58 }
  0xf9   : > { %v944_v37 = vadd.s32 %v943_v21, %v939_v0  ;;  %v1011_v20 = vshll.u32 %v3987_v5, %v1002_v50  ;;  %v1012_v14 = vshrl.u32 %v3984_v8, %v1003_v58  ;;  %v1014_v57 = vshll.u32 %v3984_v8, %v1002_v50 }
  0xfa   : > { %v1007_v18 = vor.u32 %v1006_v13, %v1005_v16  ;;  %v1010_v56 = vor.u32 %v1009_v6, %v1008_v33  ;;  %v1015_v47 = vshrl.u32 %v3988_v12, %v1003_v58  ;;  %v1017_v38 = vshll.u32 %v3988_v12, %v1002_v50 }
  0xfb   : > { %v945_v24 = vadd.s32 536870912, %v944_v37  ;;  %v1013_v2 = vor.u32 %v1012_v14, %v1011_v20  ;;  %v1018_v9 = vshrl.u32 %v3985_v26, %v1003_v58  ;;  %v544_v22 = vsub.s32 4294967266, %v3169_v31 }
  0xfc   : > { %v1016_v0 = vor.u32 %v1015_v47, %v1014_v57  ;;  %v1036_v32 = vshll.u32 %v996_v54, 8  ;;  %v1095_v21 = vand.u32 2139095040, %v3093_v44  ;;  %vm1020_vm10 = vcmp.lt.s32.totalorder %v1001_v11, 1 }
  0xfd   : > { %v3203_v52 = vshrl.u32 %v945_v24, 30  ;;  %v1019_v16 = vor.u32 %v1018_v9, %v1017_v38  ;;  %vm1023_vm11 = vcmp.lt.s32.totalorder %v1001_v11, 4  ;;  %vm607_vm12 = vcmp.lt.s32.totalorder %v3110_v35, 4 }
  0xfe   : > { %vm1022_vm13 = vcmp.lt.s32.totalorder %v1001_v11, 3  ;;  %v1025_v13 = vsel %vm1023_vm11, %v1013_v2, 2102212464  ;;  %v1028_v14 = vsel %vm1020_vm10, %v1007_v18, %v1010_v56  ;;  %v1029_v50 = vsel %vm1023_vm11, %v1016_v0, 920167782 }
  0xff   : > { %3990 = vst [vmem:[#allocation15_spill] sm:$0xff] %v3203_v52  ;;  %v947_v33 = vshll.u32 %v3203_v52, 30  ;;  %v3991_v6 = vmov 683565275   ;;  %vm1021_vm15 = vcmp.lt.s32.totalorder %v1001_v11, 2  ;;  %v1030_v54 = vsel %vm1022_vm13, %v1013_v2, %v1029_v50 }
 0x100   : > { %v1004_v20 = vshrl.u32 %v3991_v6, %v1003_v58  ;;  %v545_v47 = vadd.s32 127, %v544_v22  ;;  %v1031_v24 = vsel %vm1021_vm15, %v1028_v14, %v1030_v54  ;;  %v1032_v9 = vsel %vm1020_vm10, %v1010_v56, %v1013_v2 }
 0x101   : > { %v1033_v57 = vsel %vm1023_vm11, %v1019_v16, 1326507024  ;;  %v3211_v38 = vsub.s32 %v944_v37, %v947_v33  ;;  %v1026_v4 = vsel %vm1022_vm13, %v1010_v56, %v1025_v13  ;;  %vm604_vm2 = vcmp.lt.s32.totalorder %v3110_v35, 1 }
 0x102   : > { %v1024_v59 = vsel %vm1020_vm10, %v1004_v20, %v1007_v18  ;;  %v1034_v30 = vsel %vm1022_vm13, %v1016_v0, %v1033_v57  ;;  %v3216_v49 = vmul.u32.u64.low %v1036_v32, %v1031_v24  ;;  %v3217_v58 = vmul.u32.u64.high %v1036_v32, %v1031_v24, %v3216_v49 }
 0x103   : > { %v1035_v52 = vsel %vm1021_vm15, %v1032_v9, %v1034_v30  ;;  %v1096_v22 = vshrl.u32 %v1095_v21, 23  ;;  %vm678_vm3 = vcmp.lt.s32.totalorder %v2874_v51, 0  ;;  %v759_v14 = vmul.f32 %v758_v61, %v756_v42 }
 0x104   : > { %v950_v2 = vsub.s32 0, %v3211_v38  ;;  %v3222_v37 = vmul.u32.u64.low %v1036_v32, %v1035_v52  ;;  %v3223_v16 = vmul.u32.u64.high %v1036_v32, %v1035_v52, %v3222_v37  ;;  %v542_v18 = vshrl.u32 %v3107_v55, %v540_v23 }
 0x105   : > { %v546_v56 = vshll.u32 %v545_v47, 23  ;;  %v1027_v0 = vsel %vm1021_vm15, %v1024_v59, %v1026_v4  ;;  %v2577_v13 = vadd.s32 4294967169, %v1096_v22  ;;  %v3229_v30 = vor.u32 %v3157_v62, %v3118_v45 }
 0x106   : > { %v3233_v21 = vor.u32 %v3173_v17, %v3161_v27  ;;  %v2570_v61 = vmin.u32 %v950_v2, %v3211_v38  ;;  %v3993_v42 = vand.u32 2147483647, %v3093_v44  ;;  %v541_v55 = vshll.u32 %v3122_v29, %v3169_v31 }
 0x107   : > { %v1046_v11 = vadd.s32 1, %v3217_v58  ;;  %v1102_v4 = vadd.s32 1, %v2577_v13  ;;  %v1199_v59 = vand.u32 2139095040, %v3101_v19  ;;  %v760_v23 = vxor.u32 2147483648, %v759_v14 }
 0x108   : > { %3992 = vst [vmem:[#allocation16_spill] sm:$0xff] %v3233_v21  ;;  %v1099_v52 = vand.u32 8388607, %v3993_v42  ;;  %v613_v45 = vsel %vm607_vm12, %v3177_v39, 920167782  ;;  %v1043_v62 = vmul.u32 %v1036_v32, %v1027_v0  ;;  %vm1045_vm4 = vc.u32 %v3223_v16, %v3216_v49 }
 0x109   : > { %v3247_v27 = vor.u32 %v542_v18, %v541_v55  ;;  %v3249_v17 = vor.u32 4788187, %v546_v56  ;;  %v1047_v29 = vsel %vm1045_vm4, %v1046_v11, %v3217_v58  ;;  %vm1103_vm5 = vcmp.gt.s32.totalorder %v1102_v4, 0 }
 0x10a   : > { %v952_v31 = vclz %v2570_v61  ;;  %v1048_v50 = vadd.s32 %v1047_v29, %v1043_v62  ;;  %v1100_v33 = vor.u32 8388608, %v1099_v52  ;;  %v1104_v20 = vsel %vm1103_vm5, %v1102_v4, 0 }
 0x10b   : > { %vm606_vm6 = vcmp.lt.s32.totalorder %v3110_v35, 3  ;;  %v1106_v54 = vand.u32 31, %v1104_v20  ;;  %v3959_v47 = vand.u32 2147483647, %v3101_v19  ;;  %v1200_v32 = vshrl.u32 %v1199_v59, 23 }
 0x10c   : > { %v3994_v24 = vand.u32 2147483647, %v2874_v51  ;;  %v3265_v58 = vsel %vm606_vm6, %v3233_v21, %v613_v45  ;;  %v3271_v22 = vsel %vm604_vm2, %v3229_v30, %v3233_v21  ;;  %v1049_v2 = vadd.s32 536870912, %v1048_v50 }
 0x10d   : > { %3997 = vst [vmem:[#allocation17_spill] sm:$0xff] %v3265_v58  ;;  %v761_v37 = vsel %vm678_vm3, %v760_v23, %v759_v14  ;;  %v550_v56 = vcvt.s32.f32 %v3247_v27  ;;  %v1107_v0 = vsub.s32 32, %v1106_v54  ;;  %v2571_v13 = vadd.s32 4294967294, %v952_v31 }
 0x10e   : > { %vm3256_vm7 = vcmp.le.f32.partialorder %v3994_v24, 0.7853982  ;;  %v3277_v61 = vshrl.u32 %v1049_v2, 30  ;;  %v3279_v42 = vshll.u32 %v1100_v33, 8  ;;  %v2581_v4 = vadd.s32 4294967169, %v1200_v32 }
 0x10f   : > { %v1110_v55 = vshrl.u32 %v3989_v48, %v1107_v0  ;;  %v1113_v11 = vshrl.u32 %v3987_v5, %v1107_v0  ;;  %v1203_v14 = vand.u32 8388607, %v3959_v47  ;;  %v1109_v23 = vshll.u32 %v3991_v6, %v1106_v54  ;;  %v2243_v24 = vld [vmem:[#allocation2] sm:$0x1] }
 0x110   : > { %3998 = vst [vmem:[#allocation18_spill] sm:$0xff] %v3277_v61  ;;  %v1051_v59 = vshll.u32 %v3277_v61, 30  ;;  %v1112_v45 = vshll.u32 %v3989_v48, %v1106_v54  ;;  %v1116_v62 = vshrl.u32 %v3984_v8, %v1107_v0  ;;  %v1105_v27 = vshrl.u32 %v1104_v20, 5  ;;  %2246 = vperm.xlu1 %2700, %v2243_v24  }
 0x111   : > { %v1115_v29 = vshll.u32 %v3987_v5, %v1106_v54  ;;  %v1118_v31 = vshll.u32 %v3984_v8, %v1106_v54  ;;  %v1119_v33 = vshrl.u32 %v3988_v12, %v1107_v0  ;;  %vm2572_vm8 = vcmp.lt.s32.totalorder %v2571_v13, 0 }
 0x112   : > { %v3293_v32 = vsub.s32 %v1048_v50, %v1051_v59  ;;  %v1111_v2 = vor.u32 %v1110_v55, %v1109_v23  ;;  %v1114_v47 = vor.u32 %v1113_v11, %v1112_v45  ;;  %v1121_v57 = vshll.u32 %v3988_v12, %v1106_v54 }
 0x113   : > { %v1117_v52 = vor.u32 %v1116_v62, %v1115_v29  ;;  %v1120_v18 = vor.u32 %v1119_v33, %v1118_v31  ;;  %v1122_v19 = vshrl.u32 %v3985_v26, %v1107_v0  ;;  %v1204_v61 = vor.u32 8388608, %v1203_v14 }
 0x114   : > { %v1054_v20 = vsub.s32 0, %v3293_v32  ;;  %v1206_v44 = vadd.s32 1, %v2581_v4  ;;  %v3301_v58 = vsel %vm3256_vm7, %v2874_v51, %v761_v37  ;;  %v3303_v50 = vsel %vm2572_vm8, 0, %v2571_v13 }
 0x115   : > { %v1108_v55 = vshrl.u32 %v3991_v6, %v1107_v0  ;;  %v1123_v11 = vor.u32 %v1122_v19, %v1121_v57  ;;  %vm1124_vm9 = vcmp.lt.s32.totalorder %v1105_v27, 1  ;;  %vm1126_vm10 = vcmp.lt.s32.totalorder %v1105_v27, 3 }
 0x116   : > { %v2574_v59 = vmin.u32 %v1054_v20, %v3293_v32  ;;  %vm1127_vm11 = vcmp.lt.s32.totalorder %v1105_v27, 4  ;;  %v1132_v54 = vsel %vm1124_vm9, %v1111_v2, %v1114_v47  ;;  %v1136_v14 = vsel %vm1124_vm9, %v1114_v47, %v1117_v52 }
 0x117   : > { %v1129_v23 = vsel %vm1127_vm11, %v1117_v52, 2102212464  ;;  %v1133_v45 = vsel %vm1127_vm11, %v1120_v18, 920167782  ;;  %v1137_v4 = vsel %vm1127_vm11, %v1123_v11, 1326507024  ;;  %v1128_v13 = vsel %vm1124_vm9, %v1108_v55, %v1111_v2 }
 0x118   : > { %v960_v62 = vsub.s32 4294967266, %v3303_v50  ;;  %v1056_v29 = vclz %v2574_v59  ;;  %vm1125_vm13 = vcmp.lt.s32.totalorder %v1105_v27, 2  ;;  %v1134_v37 = vsel %vm1126_vm10, %v1117_v52, %v1133_v45 }
 0x119   : > { %v1135_v0 = vsel %vm1125_vm13, %v1132_v54, %v1134_v37  ;;  %v1138_v19 = vsel %vm1126_vm10, %v1120_v18, %v1137_v4  ;;  %vm1207_vm15 = vcmp.gt.s32.totalorder %v1206_v44, 0  ;;  %v1130_v31 = vsel %vm1126_vm10, %v1114_v47, %v1129_v23 }
 0x11a   : > { %v2575_v57 = vadd.s32 4294967294, %v1056_v29  ;;  %v1139_v33 = vsel %vm1125_vm13, %v1136_v14, %v1138_v19  ;;  %v1208_v24 = vsel %vm1207_vm15, %v1206_v44, 0  ;;  %v3999_v52 = vor.u32 %v3181_v25, %v3167_v15 }
 0x11b   : > { %v3314_v20 = vmul.u32.u64.low %v3279_v42, %v1139_v33  ;;  %v3315_v11 = vmul.u32.u64.high %v3279_v42, %v1139_v33, %v3314_v20  ;;  %v3318_v59 = vmul.u32.u64.low %v3279_v42, %v1135_v0  ;;  %v3319_v21 = vmul.u32.u64.high %v3279_v42, %v1135_v0, %v3318_v59 }
 0x11c   : > { %v3327_v18 = vsel %vm607_vm12, %v3999_v52, 1326507024  ;;  %v940_v47 = vadd.s32 %v3149_v43, %v3146_v1  ;;  %v961_v44 = vadd.s32 127, %v960_v62  ;;  %v1210_v2 = vand.u32 31, %v1208_v24 }
 0x11d   : > { %v4000_v55 = vand.u32 2147483647, %v3249_v17  ;;  %v3337_v23 = vadd.s32 %v3216_v49, %v3223_v16  ;;  %v1131_v45 = vsel %vm1125_vm13, %v1128_v13, %v1130_v31  ;;  %v4001_v15 = vsub.s32 4, %v2977_v36 }
 0x11e   : > { %v1211_v1 = vsub.s32 32, %v1210_v2  ;;  %v3347_v43 = vshll.u32 %v1204_v61, 8  ;;  %2702 = vcosq.f32 %v3301_v58  ;;  %v3352_v17 = vshrl.u32 %v3991_v6, %v2956_v53 }
 0x11f   : > { %v3333_v54 = vmul.f32 %v550_v56, %v4000_v55  ;;  %v3345_v25 = vsel %vm678_vm3, %v4001_v15, %v2977_v36  ;;  %v956_v49 = vsub.s32 32, %v3303_v50  ;;  %vm2576_vm4 = vcmp.lt.s32.totalorder %v2575_v57, 0 }
 0x120   : > { %vm1149_vm5 = vc.u32 %v3315_v11, %v3318_v59  ;;  %v1150_v16 = vadd.s32 1, %v3319_v21  ;;  %v962_v56 = vshll.u32 %v961_v44, 23  ;;  %v1147_v36 = vmul.u32 %v3279_v42, %v1131_v45 }
 0x121   : > { %v1213_v61 = vshll.u32 %v3991_v6, %v1210_v2  ;;  %v1214_v27 = vshrl.u32 %v3989_v48, %v1211_v1  ;;  %v1209_v4 = vshrl.u32 %v1208_v24, 5  ;;  %v1216_v62 = vshll.u32 %v3989_v48, %v1210_v2 }
 0x122   : > { %v1151_v14 = vsel %vm1149_vm5, %v1150_v16, %v3319_v21  ;;  %v1217_v29 = vshrl.u32 %v3987_v5, %v1211_v1  ;;  %v3364_v37 = vsel %vm2576_vm4, 0, %v2575_v57  ;;  %v1219_v19 = vshll.u32 %v3987_v5, %v1210_v2 }
 0x123   : > { %v1152_v13 = vadd.s32 %v1151_v14, %v1147_v36  ;;  %v1215_v0 = vor.u32 %v1214_v27, %v1213_v61  ;;  %v1220_v42 = vshrl.u32 %v3984_v8, %v1211_v1  ;;  %v1222_v33 = vshll.u32 %v3984_v8, %v1210_v2 }
 0x124   : > { %v1218_v31 = vor.u32 %v1217_v29, %v1216_v62  ;;  %v1223_v20 = vshrl.u32 %v3988_v12, %v1211_v1  ;;  %v957_v21 = vshll.u32 %v3211_v38, %v3303_v50  ;;  %v3372_v24 = vshrl.u32 %v940_v47, %v956_v49 }
 0x125   : > { %v3374_v52 = vor.u32 4788187, %v962_v56  ;;  %v1153_v57 = vadd.s32 536870912, %v1152_v13  ;;  %v1221_v44 = vor.u32 %v1220_v42, %v1219_v19  ;;  %v1225_v45 = vshll.u32 %v3988_v12, %v1210_v2 }
 0x126   : > { %v1224_v55 = vor.u32 %v1223_v20, %v1222_v33  ;;  %v1226_v5 = vshrl.u32 %v3985_v26, %v1211_v1  ;;  %v1064_v15 = vsub.s32 4294967266, %v3364_v37  ;;  %vm1228_vm3 = vcmp.lt.s32.totalorder %v1209_v4, 1 }
 0x127   : > { %v3379_v16 = vshrl.u32 %v1153_v57, 30  ;;  %2704 = vsinq.f32 %v3301_v58  ;;  %v1212_v8 = vshrl.u32 %v3991_v6, %v1211_v1  ;;  %vm1231_vm8 = vcmp.lt.s32.totalorder %v1209_v4, 4 }
 0x128   : > { %v1227_v47 = vor.u32 %v1226_v5, %v1225_v45  ;;  %v1236_v49 = vsel %vm1228_vm3, %v1215_v0, %v1218_v31  ;;  %v3384_v56 = vpop.eup %2702  ;;  %vm1230_vm9 = vcmp.lt.s32.totalorder %v1209_v4, 3  ;;  %v1233_v12 = vsel %vm1231_vm8, %v1221_v44, 2102212464 }
 0x129   : > { %v1155_v36 = vshll.u32 %v3379_v16, 30  ;;  %v1237_v26 = vsel %vm1231_vm8, %v1224_v55, 920167782  ;;  %vm1229_vm10 = vcmp.lt.s32.totalorder %v1209_v4, 2  ;;  %v1240_v61 = vsel %vm1228_vm3, %v1218_v31, %v1221_v44 }
 0x12a   : > { %v1238_v2 = vsel %vm1230_vm9, %v1221_v44, %v1237_v26  ;;  %v1241_v27 = vsel %vm1231_vm8, %v1227_v47, 1326507024  ;;  %v1065_v14 = vadd.s32 127, %v1064_v15  ;;  %v1232_v1 = vsel %vm1228_vm3, %v1212_v8, %v1215_v0 }
 0x12b   : > { %v3388_v58 = vsub.s32 %v1152_v13, %v1155_v36  ;;  %v1239_v62 = vsel %vm1229_vm10, %v1236_v49, %v1238_v2  ;;  %v1234_v29 = vsel %vm1230_vm9, %v1218_v31, %v1233_v12  ;;  %v1242_v19 = vsel %vm1230_vm9, %v1224_v55, %v1241_v27 }
 0x12c   : > { %v3393_v42 = vmul.u32.u64.low %v3347_v43, %v1239_v62  ;;  %v3394_v33 = vmul.u32.u64.high %v3347_v43, %v1239_v62, %v3393_v42  ;;  %v1060_v20 = vsub.s32 32, %v3364_v37  ;;  %v1243_v44 = vsel %vm1229_vm10, %v1240_v61, %v1242_v19 }
 0x12d   : > { %v1158_v57 = vsub.s32 0, %v3388_v58  ;;  %v797_v13 = vshll.u32 %v3991_v6, %v2941_v7  ;;  %v3403_v0 = vmul.u32.u64.low %v3347_v43, %v1243_v44  ;;  %v3404_v45 = vmul.u32.u64.high %v3347_v43, %v1243_v44, %v3403_v0 }
 0x12e   : > { %v798_v31 = vshrl.u32 %v3989_v48, %v2956_v53  ;;  %vm813_vm11 = vcmp.lt.s32.totalorder %v2971_v63, 2  ;;  %v1235_v5 = vsel %vm1229_vm10, %v1232_v1, %v1234_v29  ;;  %v817_v15 = vsel %vm815_vm0, %v3049_v34, 2102212464 }
 0x12f   : > { %v2578_v55 = vmin.u32 %v1158_v57, %v3388_v58  ;;  %v827_v7 = vsel %vm813_vm11, %v3086_v10, %v3090_v28  ;;  %v1061_v8 = vshll.u32 %v3293_v32, %v3364_v37  ;;  %v1066_v47 = vshll.u32 %v1065_v14, 23 }
 0x130   : > { %v1254_v53 = vadd.s32 1, %v3394_v33  ;;  %v799_v49 = vor.u32 %v798_v31, %v797_v13  ;;  %v1062_v4 = vshrl.u32 %v3337_v23, %v1060_v20  ;;  %vm470_vm0 = vcmp.lt.s32.totalorder %v2912_v3, 0 }
 0x131   : > { %v3421_v36 = vpop.eup %2704  ;;  %v1160_v12 = vclz %v2578_v55  ;;  %v3425_v26 = vmul.u32.u64.low %v2967_v60, %v827_v7  ;;  %v3426_v34 = vmul.u32.u64.high %v2967_v60, %v827_v7, %v3425_v26  ;;  %v1251_v10 = vmul.u32 %v3347_v43, %v1235_v5 }
 0x132   : > { %vm1253_vm13 = vc.u32 %v3404_v45, %v3393_v42  ;;  %v818_v28 = vsel %vm814_vm1, %v3041_v46, %v817_v15  ;;  %v820_v32 = vsel %vm812_vm14, %v799_v49, %v3041_v46  ;;  %v816_v2 = vsel %vm812_vm14, %v3352_v17, %v799_v49  ;;  %v4005_v26 = vld [vmem:[#allocation11_spill] sm:$0xff] }
 0x133   : > { %v2579_v23 = vadd.s32 4294967294, %v1160_v12  ;;  %v1255_v37 = vsel %vm1253_vm13, %v1254_v53, %v3394_v33  ;;  %v823_v43 = vsel %vm813_vm11, %v820_v32, %v3080_v41  ;;  %v1067_v61 = vor.u32 4788187, %v1066_v47 }
 0x134   : > { %v1256_v27 = vadd.s32 %v1255_v37, %v1251_v10  ;;  %v3446_v14 = vmul.u32.u64.low %v2967_v60, %v823_v43  ;;  %v3447_v1 = vmul.u32.u64.high %v2967_v60, %v823_v43, %v3446_v14  ;;  %v3454_v46 = vsel %vm606_vm6, %v3177_v39, %v3327_v18  ;;  %v4008_v43 = vld [vmem:[#allocation9_spill] sm:$0xff] }
 0x135   : > { %v959_v17 = vor.u32 %v3372_v24, %v957_v21  ;;  %vm2580_vm14 = vcmp.lt.s32.totalorder %v2579_v23, 0  ;;  %v3463_v41 = vsel %vm3256_vm7, 0, %v3345_v25  ;;  %v1063_v62 = vor.u32 %v1062_v4, %v1061_v8 }
 0x136   : > { %v1163_v29 = vsel %vm2580_vm14, 0, %v2579_v23  ;;  %v1257_v19 = vadd.s32 536870912, %v1256_v27  ;;  %v819_v33 = vsel %vm813_vm11, %v816_v2, %v818_v28  ;;  %v552_v39 = vxor.u32 2147483648, %v3333_v54  ;;  %v4006_v23 = vld [vmem:[#allocation12_spill] sm:$0xff] }
 0x137   : > { %v964_v18 = vand.u32 2147483647, %v3374_v52  ;;  %v1168_v20 = vsub.s32 4294967266, %v1163_v29  ;;  %vm837_vm1 = vc.u32 %v3426_v34, %v3446_v14  ;;  %v1068_v38 = vand.u32 2147483647, %v1067_v61  ;;  %v4007_v2 = vld [vmem:[#allocation8_spill] sm:$0xff] }
 0x138   : > { %v1164_v50 = vsub.s32 32, %v1163_v29  ;;  %v3471_v21 = vshrl.u32 %v1257_v19, 30  ;;  %v838_v9 = vadd.s32 1, %v3447_v1  ;;  %v966_v25 = vcvt.s32.f32 %v959_v17 }
 0x139   : > { %v1169_v24 = vadd.s32 127, %v1168_v20  ;;  %v835_v57 = vmul.u32 %v2967_v60, %v819_v33  ;;  %v1603_v63 = vand.u32 3, %v3463_v41  ;;  %v1070_v44 = vcvt.s32.f32 %v1063_v62 }
 0x13a   : > { %v1148_v52 = vadd.s32 %v3318_v59, %v3315_v11  ;;  %v1259_v13 = vshll.u32 %v3471_v21, 30  ;;  %v839_v0 = vsel %vm837_vm1, %v838_v9, %v3447_v1  ;;  %v553_v31 = vsel %vm470_vm0, %v552_v39, %v3333_v54 }
 0x13b   : > { %v967_v55 = vmul.f32 %v966_v25, %v964_v18  ;;  %v773_v5 = vxor.u32 2147483648, %v3421_v36  ;;  %v840_v15 = vadd.s32 %v839_v0, %v835_v57  ;;  %v1071_v7 = vmul.f32 %v1070_v44, %v1068_v38 }
 0x13c   : > { %v1166_v60 = vshrl.u32 %v1148_v52, %v1164_v50  ;;  %v3484_v8 = vsub.s32 %v1256_v27, %v1259_v13  ;;  %v776_v47 = vxor.u32 2147483648, %v3384_v56  ;;  %v1170_v53 = vshll.u32 %v1169_v24, 23  ;;  %v4013_v52 = vld [vmem:[#allocation16_spill] sm:$0xff]  ;;  %v4014_v13 = vld [vmem:[#allocation14_spill] sm:$0xff] }
 0x13d   : > { %v841_v11 = vadd.s32 536870912, %v840_v15  ;;  %vm1605_vm7 = vcmp.eq.s32.totalorder %v1603_v63, 0  ;;  %v4002_v59 = vand.u32 2147483647, %v2912_v3  ;;  %v1165_v54 = vshll.u32 %v3388_v58, %v1163_v29  ;;  %v4009_v29 = vld [vmem:[#allocation6_spill] sm:$0xff] }
 0x13e   : > { %v1262_v4 = vsub.s32 0, %v3484_v8  ;;  %v589_v12 = vshll.u32 %v3991_v6, %v3069_v40  ;;  %v590_v10 = vshrl.u32 %v3989_v48, %v4005_v26  ;;  %v1607_v32 = vsel %vm1605_vm7, %v3384_v56, %v773_v5 }
 0x13f   : > { %vm3489_vm15 = vcmp.le.f32.partialorder %v4002_v59, 0.7853982  ;;  %v842_v28 = vshrl.u32 %v841_v11, 30  ;;  %vm1608_vm4 = vcmp.eq.s32.totalorder %v1603_v63, 2  ;;  %v554_v37 = vsub.s32 4, %v4006_v23  ;;  %v4015_v11 = vld [vmem:[#allocation17_spill] sm:$0xff] }
 0x140   : > { %vm886_vm5 = vcmp.lt.s32.totalorder %v4007_v2, 0  ;;  %vm990_vm3 = vcmp.lt.s32.totalorder %v4008_v43, 0  ;;  %v1167_v58 = vor.u32 %v1166_v60, %v1165_v54  ;;  %v2582_v61 = vmin.u32 %v1262_v4, %v3484_v8 }
 0x141   : > { %v1610_v40 = vsel %vm1608_vm4, %v776_v47, %v3421_v36  ;;  %v591_v48 = vor.u32 %v590_v10, %v589_v12  ;;  %v968_v27 = vxor.u32 2147483648, %v967_v55  ;;  %v1171_v1 = vor.u32 4788187, %v1170_v53 }
 0x142   : > { %vm3967_vm8 = vweird.f32 %v2874_v51  ;;  %v843_v17 = vshll.u32 %v842_v28, 30  ;;  %v556_v62 = vsel %vm3489_vm15, %v2912_v3, %v553_v31  ;;  %vm782_vm9 = vcmp.lt.s32.totalorder %v4009_v29, 0 }
 0x143   : > { %v1072_v19 = vxor.u32 2147483648, %v1071_v7  ;;  %v1264_v33 = vclz %v2582_v61  ;;  %vm1604_vm10 = vcmp.lt.s32.totalorder %v1603_v63, 2  ;;  %vm605_vm11 = vcmp.lt.s32.totalorder %v3110_v35, 2 }
 0x144   : > { %v3515_v39 = vsub.s32 %v840_v15, %v843_v17  ;;  %v1611_v18 = vsel %vm1604_vm10, %v1607_v32, %v1610_v40  ;;  %v555_v20 = vsel %vm470_vm0, %v554_v37, %v4006_v23  ;;  %v619_v38 = vsel %vm605_vm11, %v3271_v22, %v3454_v46  ;;  %v3564_v37 = vpop.permute.xlu1 %2133 }
 0x145   : > { %v1174_v50 = vcvt.s32.f32 %v1167_v58  ;;  %v2583_v9 = vadd.s32 4294967294, %v1264_v33  ;;  %2706 = vcosq.f32 %v556_v62  ;;  %v612_v25 = vsel %vm604_vm2, %v591_v48, %v3229_v30 }
 0x146   : > { %v1172_v24 = vand.u32 2147483647, %v1171_v1  ;;  %v4010_v57 = vand.u32 2147483647, %v4009_v29  ;;  %v846_v44 = vsub.s32 0, %v3515_v39  ;;  %2708 = vsinq.f32 %v556_v62 }
 0x147   : > { %v609_v22 = vsel %vm607_vm12, %v4013_v52, 2102212464  ;;  %vm2584_vm0 = vcmp.lt.s32.totalorder %v2583_v9, 0  ;;  %v588_v46 = vshrl.u32 %v3991_v6, %v4005_v26  ;;  %v866_v53 = vsub.s32 4, %v842_v28 }
 0x148   : > { %vm3529_vm13 = vcmp.le.f32.partialorder %v4010_v57, 0.7853982  ;;  %v3540_v0 = vmul.u32.u64.low %v4014_v13, %v619_v38  ;;  %v3541_v31 = vmul.u32.u64.high %v4014_v13, %v619_v38, %v3540_v0  ;;  %v1267_v15 = vsel %vm2584_vm0, 0, %v2583_v9 }
 0x149   : > { %v2566_v60 = vmin.u32 %v846_v44, %v3515_v39  ;;  %v615_v59 = vsel %vm605_vm11, %v612_v25, %v4015_v11  ;;  %v1272_v54 = vsub.s32 4294967266, %v1267_v15  ;;  %v3549_v4 = vsel %vm3489_vm15, 0, %v555_v20  ;;  %v4019_v44 = vld [vmem:[#allocation7_spill] sm:$0xff]  ;;  %v4021_v11 = vld [vmem:[#allocation10_spill] sm:$0xff] }
 0x14a   : > { %v608_v6 = vsel %vm604_vm2, %v588_v46, %v591_v48  ;;  %v610_v12 = vsel %vm606_vm6, %v3229_v30, %v609_v22  ;;  %v969_v26 = vsel %vm886_vm5, %v968_v27, %v967_v55  ;;  %v3560_v10 = vsel %vm990_vm3, %v1072_v19, %v1071_v7 }
 0x14b   : > { %v3562_v32 = vmul.f32 %v1174_v50, %v1172_v24  ;;  %v848_v23 = vclz %v2566_v60  ;;  %v1273_v49 = vadd.s32 127, %v1272_v54  ;;  %v1612_v58 = vsel %vm3967_vm8, nan, %v1611_v18 }
 0x14c   : > { %v3569_v61 = vmul.u32.u64.low %v4014_v13, %v615_v59  ;;  %v3570_v40 = vmul.u32.u64.high %v4014_v13, %v615_v59, %v3569_v61  ;;  %v867_v55 = vsel %vm782_vm9, %v866_v53, %v842_v28  ;;  %v611_v7 = vsel %vm605_vm11, %v608_v6, %v610_v12 }
 0x14d   : > { %v2567_v30 = vadd.s32 4294967294, %v848_v23  ;;  %v3578_v48 = vand.u32 3, %v3549_v4  ;;  %v1252_v27 = vadd.s32 %v3393_v42, %v3404_v45  ;;  %v1268_v1 = vsub.s32 32, %v1267_v15 }
 0x14e   : > { %v1274_v17 = vshll.u32 %v1273_v49, 23  ;;  %v836_v62 = vadd.s32 %v3446_v14, %v3426_v34  ;;  %v1176_v19 = vxor.u32 2147483648, %v3562_v32  ;;  %v3586_v33 = vmul.f32 %v3564_v37, %v1612_v58 }
 0x14f   : > { %vm2568_vm12 = vcmp.lt.s32.totalorder %v2567_v30, 0  ;;  %vm629_vm2 = vc.u32 %v3541_v31, %v3569_v61  ;;  %v3590_v35 = vpop.eup %2706  ;;  %v3594_v42 = vsel %vm3529_vm13, 0, %v867_v55  ;;  %v627_v45 = vmul.u32 %v4014_v13, %v611_v7  ;;  %v4023_v7 = vld [vmem:[#allocation18_spill] sm:$0xff] }
 0x150   : > { %v851_v28 = vsel %vm2568_vm12, 0, %v2567_v30  ;;  %v630_v34 = vadd.s32 1, %v3570_v40  ;;  %v3598_v14 = vpop.eup %2708  ;;  %v1269_v18 = vshll.u32 %v3484_v8, %v1267_v15  ;;  %vm1399_vm6 = vcmp.eq.s32.totalorder %v3578_v48, 0  ;;  %v4020_v15 = vld [vmem:[#allocation15_spill] sm:$0xff] }
 0x151   : > { %v852_v20 = vsub.s32 32, %v851_v28  ;;  %v856_v38 = vsub.s32 4294967266, %v851_v28  ;;  %v1270_v50 = vshrl.u32 %v1252_v27, %v1268_v1  ;;  %v1275_v9 = vor.u32 4788187, %v1274_v17 }
 0x152   : > { %v631_v25 = vsel %vm629_vm2, %v630_v34, %v3570_v40  ;;  %v4016_v24 = vand.u32 2147483647, %v4007_v2  ;;  %vm3970_vm1 = vcmp.lt.s32.totalorder %v4019_v44, 0  ;;  %v853_v52 = vshll.u32 %v3515_v39, %v851_v28 }
 0x153   : > { %v854_v22 = vshrl.u32 %v836_v62, %v852_v20  ;;  %v857_v8 = vadd.s32 127, %v856_v38  ;;  %v632_v46 = vadd.s32 %v631_v25, %v627_v45  ;;  %v565_v13 = vxor.u32 2147483648, %v3598_v14  ;;  %v4024_v38 = vld [vmem:[#allocation13_spill] sm:$0xff] }
 0x154   : > { %vm3605_vm14 = vcmp.le.f32.partialorder %v4016_v24, 0.7853982  ;;  %v568_v0 = vxor.u32 2147483648, %v3590_v35  ;;  %v970_v60 = vsub.s32 4, %v4020_v15  ;;  %vm1094_vm7 = vcmp.lt.s32.totalorder %v4021_v11, 0 }
 0x155   : > { %v972_v53 = vsel %vm3605_vm14, %v4007_v2, %v969_v26  ;;  %v855_v59 = vor.u32 %v854_v22, %v853_v52  ;;  %v858_v54 = vshll.u32 %v857_v8, 23  ;;  %v633_v6 = vadd.s32 536870912, %v632_v46 }
 0x156   : > { %2710 = vcosq.f32 %v972_v53  ;;  %v1271_v39 = vor.u32 %v1270_v50, %v1269_v18  ;;  %vm1402_vm15 = vcmp.eq.s32.totalorder %v3578_v48, 2  ;;  %v971_v12 = vsel %vm886_vm5, %v970_v60, %v4020_v15 }
 0x157   : > { %2712 = vsinq.f32 %v972_v53  ;;  %v1276_v23 = vand.u32 2147483647, %v1275_v9  ;;  %v859_v49 = vor.u32 4788187, %v858_v54  ;;  %vm3968_vm4 = vweird.f32 %v2912_v3 }
 0x158   : > { %v634_v58 = vshrl.u32 %v633_v6, 30  ;;  %v973_v26 = vsel %vm3605_vm14, 0, %v971_v12  ;;  %v862_v40 = vcvt.s32.f32 %v855_v59  ;;  %v4022_v55 = vand.u32 2147483647, %v4008_v43 }
 0x159   : > { %v977_v30 = vadd.s32 3, %v973_v26  ;;  %v1074_v27 = vsub.s32 4, %v4023_v7  ;;  %v860_v1 = vand.u32 2147483647, %v859_v49  ;;  %v1278_v45 = vcvt.s32.f32 %v1271_v39 }
 0x15a   : > { %vm989_vm10 = vcmp.le.f32.partialorder %v4022_v55, 0.7853982  ;;  %v635_v17 = vshll.u32 %v634_v58, 30  ;;  %v658_v62 = vsub.s32 4, %v634_v58  ;;  %v1401_v34 = vsel %vm1399_vm6, %v3590_v35, %v565_v13 }
 0x15b   : > { %v1076_v28 = vsel %vm989_vm10, %v4008_v43, %v3560_v10  ;;  %v1404_v18 = vsel %vm1402_vm15, %v568_v0, %v3598_v14  ;;  %v1075_v20 = vsel %vm990_vm3, %v1074_v27, %v4023_v7  ;;  %vm3969_vm5 = vcmp.lt.s32.totalorder %v4024_v38, 0 }
 0x15c   : > { %v863_v10 = vmul.f32 %v862_v40, %v860_v1  ;;  %v3644_v50 = vsub.s32 %v632_v46, %v635_v17  ;;  %v1077_v9 = vsel %vm989_vm10, 0, %v1075_v20  ;;  %2714 = vcosq.f32 %v1076_v28  ;;  %v3677_v40 = vpop.permute.xlu0 %2129 }
 0x15d   : > { %v1279_v25 = vmul.f32 %v1278_v45, %v1276_v23  ;;  %v4025_v24 = vand.u32 2147483647, %v4019_v44  ;;  %v659_v52 = vsel %vm3970_vm1, %v658_v62, %v634_v58  ;;  %vm1398_vm0 = vcmp.lt.s32.totalorder %v3578_v48, 2 }
 0x15e   : > { %v864_v22 = vxor.u32 2147483648, %v863_v10  ;;  %v638_v8 = vsub.s32 0, %v3644_v50  ;;  %v1405_v15 = vsel %vm1398_vm0, %v1401_v34, %v1404_v18  ;;  %v978_v46 = vand.u32 3, %v977_v30 }
 0x15f   : > { %vm3648_vm11 = vcmp.le.f32.partialorder %v4025_v24, 0.7853982  ;;  %v3661_v60 = vsel %vm1094_vm7, %v1176_v19, %v3562_v32  ;;  %v3664_v53 = vand.u32 3, %v3594_v42  ;;  %2716 = vsinq.f32 %v1076_v28 }
 0x160   : > { %v1081_v59 = vadd.s32 3, %v1077_v9  ;;  %v2711_v54 = vpop.eup %2710  ;;  %v865_v48 = vsel %vm782_vm9, %v864_v22, %v863_v10  ;;  %v2558_v6 = vmin.u32 %v638_v8, %v3644_v50  ;;  %v661_v39 = vsel %vm3648_vm11, 0, %v659_v52 }
 0x161   : > { %v873_v12 = vadd.s32 3, %v3594_v42  ;;  %v2713_v23 = vpop.eup %2712  ;;  %v1280_v49 = vxor.u32 2147483648, %v1279_v25  ;;  %v868_v32 = vsel %vm3529_vm13, %v4009_v29, %v865_v48  ;;  %v1406_v19 = vsel %vm3968_vm4, nan, %v1405_v15 }
 0x162   : > { %v984_v58 = vxor.u32 2147483648, %v2711_v54  ;;  %2718 = vcosq.f32 %v868_v32  ;;  %v640_v30 = vclz %v2558_v6  ;;  %vm980_vm3 = vcmp.eq.s32.totalorder %v978_v46, 0 }
 0x163   : > { %v981_v55 = vxor.u32 2147483648, %v2713_v23  ;;  %2720 = vsinq.f32 %v868_v32  ;;  %v665_v7 = vadd.s32 3, %v661_v39  ;;  %vm983_vm9 = vcmp.eq.s32.totalorder %v978_v46, 2 }
 0x164   : > { %v3679_v42 = vand.u32 3, %v1081_v59  ;;  %v2559_v27 = vadd.s32 4294967294, %v640_v30  ;;  %v3681_v1 = vand.u32 3, %v873_v12  ;;  %v985_v17 = vsel %vm983_vm9, %v984_v58, %v2713_v23 }
 0x165   : > { %v982_v63 = vsel %vm980_vm3, %v2711_v54, %v981_v55  ;;  %v3685_v62 = vsel %vm3969_vm5, %v1280_v49, %v1279_v25  ;;  %v628_v28 = vadd.s32 %v3569_v61, %v3541_v31  ;;  %v3690_v45 = vmul.f32 %v3677_v40, %v1406_v19 }
 0x166   : > { %v1809_v34 = vand.u32 3, %v973_v26  ;;  %v2715_v18 = vpop.eup %2714  ;;  %vm1711_vm13 = vcmp.eq.s32.totalorder %v3664_v53, 2  ;;  %vm2560_vm12 = vcmp.lt.s32.totalorder %v2559_v27, 0  ;;  %v3693_v20 = vand.u32 3, %v661_v39 }
 0x167   : > { %vm979_vm2 = vcmp.lt.s32.totalorder %v978_v46, 2  ;;  %v1912_v10 = vand.u32 3, %v1077_v9  ;;  %vm1708_vm6 = vcmp.eq.s32.totalorder %v3664_v53, 0  ;;  %v643_v24 = vsel %vm2560_vm12, 0, %v2559_v27 }
 0x168   : > { %v3696_v25 = vand.u32 3, %v665_v7  ;;  %v3698_v52 = vsel %vm979_vm2, %v982_v63, %v985_v17  ;;  %v644_v31 = vsub.s32 32, %v643_v24  ;;  %v648_v61 = vsub.s32 4294967266, %v643_v24 }
 0x169   : > { %vm1084_vm10 = vcmp.eq.s32.totalorder %v3679_v42, 0  ;;  %vm1087_vm0 = vcmp.eq.s32.totalorder %v3679_v42, 2  ;;  %v2717_v26 = vpop.eup %2716  ;;  %v1088_v9 = vxor.u32 2147483648, %v2715_v18  ;;  %vm1810_vm12 = vcmp.lt.s32.totalorder %v1809_v34, 2 }
 0x16a   : > { %vm1811_vm8 = vcmp.eq.s32.totalorder %v1809_v34, 0  ;;  %vm1814_vm2 = vcmp.eq.s32.totalorder %v1809_v34, 2  ;;  %v645_v22 = vshll.u32 %v3644_v50, %v643_v24  ;;  %v646_v8 = vshrl.u32 %v628_v28, %v644_v31 }
 0x16b   : > { %v649_v15 = vadd.s32 127, %v648_v61  ;;  %vm3971_vm4 = vweird.f32 %v4007_v2  ;;  %vm1080_vm5 = vweird.f32 %v4008_v43  ;;  %v1085_v46 = vxor.u32 2147483648, %v2717_v26 }
 0x16c   : > { %v1813_v59 = vsel %vm1811_vm8, %v2711_v54, %v981_v55  ;;  %v1816_v48 = vsel %vm1814_vm2, %v984_v58, %v2713_v23  ;;  %vm1914_vm1 = vcmp.eq.s32.totalorder %v1912_v10, 0  ;;  %v1178_v6 = vsub.s32 4, %v3379_v16  ;;  %v2719_v39 = vpop.eup %2718 }
 0x16d   : > { %vm872_vm9 = vweird.f32 %v4009_v29  ;;  %v647_v12 = vor.u32 %v646_v8, %v645_v22  ;;  %v650_v49 = vshll.u32 %v649_v15, 23  ;;  %vm875_vm3 = vcmp.lt.s32.totalorder %v3681_v1, 2  ;;  %v2721_v19 = vpop.eup %2720 }
 0x16e   : > { %vm1917_vm15 = vcmp.eq.s32.totalorder %v1912_v10, 2  ;;  %v4028_v50 = vand.u32 2147483647, %v4021_v11  ;;  %v880_v54 = vxor.u32 2147483648, %v2719_v39  ;;  %v1086_v23 = vsel %vm1084_vm10, %v2715_v18, %v1085_v46 }
 0x16f   : > { %v1089_v58 = vsel %vm1087_vm0, %v1088_v9, %v2717_v26  ;;  %v1919_v30 = vsel %vm1917_vm15, %v1088_v9, %v2717_v26  ;;  %v877_v55 = vxor.u32 2147483648, %v2721_v19  ;;  %v651_v7 = vor.u32 4788187, %v650_v49 }
 0x170   : > { %vm3714_vm14 = vcmp.le.f32.partialorder %v4028_v50, 0.7853982  ;;  %v1916_v27 = vsel %vm1914_vm1, %v2715_v18, %v1085_v46  ;;  %v1713_v17 = vsel %vm1711_vm13, %v880_v54, %v2721_v19  ;;  %v1817_v28 = vsel %vm1810_vm12, %v1813_v59, %v1816_v48  ;;  %v3759_v48 = vpop.permute.xlu1 %2137 }
 0x171   : > { %v1180_v63 = vsel %vm3714_vm14, %v4021_v11, %v3661_v60  ;;  %vm1913_vm8 = vcmp.lt.s32.totalorder %v1912_v10, 2  ;;  %v1179_v24 = vsel %vm1094_vm7, %v1178_v6, %v3379_v16  ;;  %v1710_v31 = vsel %vm1708_vm6, %v2719_v39, %v877_v55 }
 0x172   : > { %v652_v61 = vand.u32 2147483647, %v651_v7  ;;  %v654_v18 = vcvt.s32.f32 %v647_v12  ;;  %vm4031_vm1 = vcmp.lt.s32.totalorder %v3679_v42, 2  ;;  %vm4032_vm15 = vcmp.eq.s32.totalorder %v3681_v1, 2 }
 0x173   : > { %v1090_v26 = vsel %vm4031_vm1, %v1086_v23, %v1089_v58  ;;  %v881_v60 = vsel %vm4032_vm15, %v880_v54, %v2721_v19  ;;  %v1920_v9 = vsel %vm1913_vm8, %v1916_v27, %v1919_v30  ;;  %v1181_v34 = vsel %vm3714_vm14, 0, %v1179_v24 }
 0x174   : > { %2722 = vcosq.f32 %v1180_v63  ;;  %vm4033_vm13 = vcmp.lt.s32.totalorder %v3664_v53, 2  ;;  %v655_v16 = vmul.f32 %v654_v18, %v652_v61  ;;  %vm4034_vm7 = vcmp.eq.s32.totalorder %v3681_v1, 0 }
 0x175   : > { %v1714_v10 = vsel %vm4033_vm13, %v1710_v31, %v1713_v17  ;;  %v878_v22 = vsel %vm4034_vm7, %v2719_v39, %v877_v55  ;;  %2724 = vsinq.f32 %v1180_v63  ;;  %v3747_v42 = vsel %vm1080_vm5, nan, %v1090_v26 }
 0x176   : > { %v3751_v8 = vsel %vm3971_vm4, nan, %v1817_v28  ;;  %v1185_v15 = vadd.s32 3, %v1181_v34  ;;  %v4035_v46 = vand.u32 2147483647, %v4024_v38  ;;  %v656_v53 = vxor.u32 2147483648, %v655_v16 }
 0x177   : > { %v1921_v6 = vsel %vm1080_vm5, nan, %v1920_v9  ;;  %v1282_v39 = vsub.s32 4, %v3471_v21  ;;  %v1715_v49 = vsel %vm872_vm9, nan, %v1714_v10  ;;  %v882_v50 = vsel %vm875_vm3, %v878_v22, %v881_v60 }
 0x178   : > { %vm3755_vm6 = vcmp.le.f32.partialorder %v4035_v46, 0.7853982  ;;  %v1186_v32 = vand.u32 3, %v1185_v15  ;;  %vm4038_vm14 = vcmp.lt.s32.totalorder %v4019_v44, 0  ;;  %vm4039_vm5 = vcmp.lt.s32.totalorder %v4024_v38, 0 }
 0x179   : > { %v1284_v12 = vsel %vm3755_vm6, %v4024_v38, %v3685_v62  ;;  %v657_v19 = vsel %vm4038_vm14, %v656_v53, %v655_v16  ;;  %v1283_v43 = vsel %vm4039_vm5, %v1282_v39, %v3471_v21  ;;  %v561_v54 = vadd.s32 3, %v3549_v4 }
 0x17a   : > { %2726 = vcosq.f32 %v1284_v12  ;;  %v660_v62 = vsel %vm3648_vm11, %v4019_v44, %v657_v19  ;;  %v3782_v23 = vmul.f32 %v3759_v48, %v1921_v6  ;;  %v2015_v1 = vand.u32 3, %v1181_v34 }
 0x17b   : > { %2728 = vsinq.f32 %v1284_v12  ;;  %v769_v58 = vadd.s32 3, %v3463_v41  ;;  %v3786_v30 = vmul.f32 %v3564_v37, %v1715_v49  ;;  %v3790_v21 = vsel %vm872_vm9, nan, %v882_v50 }
 0x17c   : > { %2730 = vcosq.f32 %v660_v62  ;;  %v1285_v4 = vsel %vm3755_vm6, 0, %v1283_v43  ;;  %vm1188_vm0 = vcmp.eq.s32.totalorder %v1186_v32, 0  ;;  %vm1191_vm3 = vcmp.eq.s32.totalorder %v1186_v32, 2 }
 0x17d   : > { %2732 = vsinq.f32 %v660_v62  ;;  %v1289_v57 = vadd.s32 3, %v1285_v4  ;;  %v2118_v55 = vand.u32 3, %v1285_v4  ;;  %v562_v41 = vand.u32 3, %v561_v54 }
 0x17e   : > { %v2723_v7 = vpop.eup %2722  ;;  %vm2016_vm12 = vcmp.lt.s32.totalorder %v2015_v1, 2  ;;  %vm2017_vm2 = vcmp.eq.s32.totalorder %v2015_v1, 0  ;;  %vm2020_vm8 = vcmp.eq.s32.totalorder %v2015_v1, 2  ;;  %v3795_v37 = vand.u32 3, %v769_v58  ;;  %v2142_v1 = vpop.permute.xlu0 %2141 }
 0x17f   : > { %v2725_v29 = vpop.eup %2724  ;;  %vm671_vm1 = vcmp.eq.s32.totalorder %v3696_v25, 2  ;;  %v1192_v27 = vxor.u32 2147483648, %v2723_v7  ;;  %vm1288_vm15 = vweird.f32 %v4024_v38  ;;  %v1290_v63 = vand.u32 3, %v1289_v57 }
 0x180   : > { %vm2119_vm13 = vcmp.lt.s32.totalorder %v2118_v55, 2  ;;  %vm2120_vm7 = vcmp.eq.s32.totalorder %v2118_v55, 0  ;;  %vm1502_vm6 = vcmp.eq.s32.totalorder %v3693_v20, 0  ;;  %v1189_v17 = vxor.u32 2147483648, %v2725_v29 }
 0x181   : > { %vm563_vm5 = vcmp.lt.s32.totalorder %v562_v41, 2  ;;  %vm564_vm4 = vcmp.eq.s32.totalorder %v562_v41, 0  ;;  %vm567_vm11 = vcmp.eq.s32.totalorder %v562_v41, 2  ;;  %v1193_v28 = vsel %vm1191_vm3, %v1192_v27, %v2725_v29 }
 0x182   : > { %v2022_v24 = vsel %vm2020_vm8, %v1192_v27, %v2725_v29  ;;  %v566_v31 = vsel %vm564_vm4, %v3590_v35, %v565_v13  ;;  %v569_v61 = vsel %vm567_vm11, %v568_v0, %v3598_v14  ;;  %vm664_vm14 = vweird.f32 %v4019_v44 }
 0x183   : > { %v1190_v26 = vsel %vm1188_vm0, %v2723_v7, %v1189_v17  ;;  %v2019_v60 = vsel %vm2017_vm2, %v2723_v7, %v1189_v17  ;;  %vm2123_vm9 = vcmp.eq.s32.totalorder %v2118_v55, 2  ;;  %v570_v9 = vsel %vm563_vm5, %v566_v31, %v569_v61 }
 0x184   : > { %v2727_v18 = vpop.eup %2726  ;;  %vm1291_vm3 = vcmp.lt.s32.totalorder %v1290_v63, 2  ;;  %vm1292_vm8 = vcmp.eq.s32.totalorder %v1290_v63, 0  ;;  %v2023_v16 = vsel %vm2016_vm12, %v2019_v60, %v2022_v24  ;;  %vm4040_vm4 = vcmp.lt.s32.totalorder %v1186_v32, 2 }
 0x185   : > { %v2729_v34 = vpop.eup %2728  ;;  %v1296_v10 = vxor.u32 2147483648, %v2727_v18  ;;  %v1194_v13 = vsel %vm4040_vm4, %v1190_v26, %v1193_v28  ;;  %vm1295_vm10 = vcmp.eq.s32.totalorder %v1290_v63, 2  ;;  %vm771_vm11 = vcmp.lt.s32.totalorder %v3795_v37, 2 }
 0x186   : > { %v1293_v22 = vxor.u32 2147483648, %v2729_v34  ;;  %v2731_v35 = vpop.eup %2730  ;;  %vm4041_vm0 = vweird.f32 %v4021_v11  ;;  %vm4042_vm2 = vweird.f32 %v2912_v3  ;;  %vm772_vm12 = vcmp.eq.s32.totalorder %v3795_v37, 0 }
 0x187   : > { %v1297_v14 = vsel %vm1295_vm10, %v1296_v10, %v2729_v34  ;;  %v2024_v0 = vsel %vm4041_vm0, nan, %v2023_v16  ;;  %v2125_v15 = vsel %vm2123_vm9, %v1296_v10, %v2729_v34  ;;  %v571_v46 = vsel %vm4042_vm2, nan, %v570_v9  ;;  %v2733_v59 = vpop.eup %2732 }
 0x188   : > { %v672_v53 = vxor.u32 2147483648, %v2731_v35  ;;  %v1294_v6 = vsel %vm1292_vm8, %v2727_v18, %v1293_v22  ;;  %v2122_v39 = vsel %vm2120_vm7, %v2727_v18, %v1293_v22  ;;  %v669_v12 = vxor.u32 2147483648, %v2733_v59 }
 0x189   : > { %v1298_v49 = vsel %vm1291_vm3, %v1294_v6, %v1297_v14  ;;  %v2126_v50 = vsel %vm2119_vm13, %v2122_v39, %v2125_v15  ;;  %v774_v32 = vsel %vm772_vm12, %v3384_v56, %v773_v5  ;;  %vm4043_vm10 = vcmp.eq.s32.totalorder %v3693_v20, 2  ;;  %v292_v39 = vld [vmem:[%s284_s16] sm:$0xff] }
 0x18a   : > { %v1507_v3 = vsel %vm4043_vm10, %v672_v53, %v2733_v59  ;;  %v673_v19 = vsel %vm671_vm1, %v672_v53, %v2733_v59  ;;  %v2127_v43 = vsel %vm1288_vm15, nan, %v2126_v50  ;;  %vm775_vm9 = vcmp.eq.s32.totalorder %v3795_v37, 2 }
 0x18b   : > { %v1504_v54 = vsel %vm1502_vm6, %v2731_v35, %v669_v12  ;;  %vm4044_vm13 = vcmp.eq.s32.totalorder %v3696_v25, 0  ;;  %v1299_v5 = vsel %vm1288_vm15, nan, %v1298_v49  ;;  %v777_v58 = vsel %vm775_vm9, %v776_v47, %v3421_v36  ;;  %vm4047_vm15 = vmmov %vm4041_vm0 }
 0x18c   : > { %v670_v62 = vsel %vm4044_vm13, %v2731_v35, %v669_v12  ;;  %vm4045_vm1 = vcmp.lt.s32.totalorder %v3693_v20, 2  ;;  %vm4046_vm7 = vcmp.lt.s32.totalorder %v3696_v25, 2  ;;  %v2151_v55 = vmul.f32 %v2142_v1, %v2127_v43 }
 0x18d   : > { %v1508_v4 = vsel %vm4045_vm1, %v1504_v54, %v1507_v3  ;;  %v674_v57 = vsel %vm4046_vm7, %v670_v62, %v673_v19  ;;  %v778_v41 = vsel %vm771_vm11, %v774_v32, %v777_v58  ;;  %v1195_v56 = vsel %vm4047_vm15, nan, %v1194_v13  ;;  %v291_v58 = vld [vmem:[%s279_s20] sm:$0x3] }
 0x18e   : > { %v1509_v7 = vsel %vm664_vm14, nan, %v1508_v4  ;;  %v675_v38 = vsel %vm664_vm14, nan, %v674_v57  ;;  %vm4048_vm6 = vweird.f32 %v2874_v51  ;;  %v1303_v37 = vpack.c.bf16 %v1299_v5, %v3747_v42  ;;  %v4050_v57 = vld [vmem:[#allocation5_spill] sm:$0xff] }
 0x18f   : > { %v779_v36 = vsel %vm4048_vm6, nan, %v778_v41  ;;  %v2145_v47 = vmul.f32 %v3677_v40, %v1509_v7  ;;  %v1301_v20 = vpack.c.bf16 %v3790_v21, %v675_v38  ;;  %v2150_v29 = vmul.f32 %v2142_v1, %v2024_v0  ;;  %v2247_v54 = vpop.permute.xlu1 %2246 }
 0x190   : > { %v1300_v25 = vpack.c.bf16 %v779_v36, %v571_v46  ;;  %v2152_v27 = vpack.c.bf16 %v3586_v33, %v3690_v45  ;;  %vm4049_vm14 = vweird.f32 %v4007_v2  ;;  %v2155_v11 = vpack.c.bf16 %v2151_v55, %v3782_v23  ;;  %v2156_v2 = vld [vmem:[%s3919_s4] sm:$0x3]  ;;  %v4051_v36 = vld [vmem:[#allocation4_spill] sm:$0xff] }
 0x191   : > { %2161 = vmatprep.subr.bf16.mxu0 %v1301_v20  ;;  %v987_v44 = vsel %vm4049_vm14, nan, %v3698_v52  ;;  %v2153_v51 = vpack.c.bf16 %v3786_v30, %v2145_v47  ;;  %v2148_v40 = vmul.f32 %v3759_v48, %v3751_v8  ;;  %vm2157_vm5 = vcmask 261120   ;;  %v3875_v33 = vld [vmem:[%s2836_s11] sm:$0xff] }
 0x192   : > { %2162 = vmatpush1.bf16.msra.mxu0 %v1300_v25  ;;  %v1302_v21 = vpack.c.bf16 %v1195_v56, %v987_v44  ;;  %v2623_v45 = vadd.f32 -0.5, %v3875_v33  ;;  %v2255_v52 = vmul.f32 %v3875_v33, %v3875_v33  ;;  %v2621_v34 = vrot.slane %v3875_v33, 9 }
 0x193   : > { %2202 = vmatprep.subr.bf16.mxu1 %v2153_v51  ;;  %2163 = vmatprep.subr.bf16.mxu0 %v1303_v37  ;;  %v2154_v42 = vpack.c.bf16 %v2150_v29, %v2148_v40  ;;  %v2622_v13 = vrot.slane %v3875_v33, 10  ;;  %v2364_v43 = vmul.f32 %v292_v39, %v292_v39  ;;  %v2252_v55 = vrot.slane %v2247_v54, %v4050_v57 }
 0x194   : > { %2203 = vmatpush1.bf16.msra.mxu1 %v2152_v27  ;;  %v2278_v8 = vmul.f32 %v2623_v45, %v2623_v45  ;;  %v2256_v48 = vmul.f32 -0.02, %v2255_v52  ;;  %v2626_v10 = vrot.slane %v2623_v45, 9  ;;  %v2627_v22 = vrot.slane %v2623_v45, 10 }
 0x195   : > { %2204 = vmatprep.subr.bf16.mxu1 %v2155_v11  ;;  %v2631_v4 = vrot.slane %v2364_v43, 9  ;;  %v2331_v38 = vrot.slane %v291_v58, %v4050_v57  ;;  %v2335_v47 = vrot.slane %v291_v58, %v4051_v36  ;;  %v2632_v25 = vrot.slane %v2364_v43, 10 }
 0x196   : > { %2164 = vmatpush1.bf16.msra.mxu0 %v1302_v21  ;;  %v2279_v23 = vmul.f32 -0.125, %v2278_v8  ;;  %v2619_v30 = vrot.slane %v2256_v48, 9  ;;  %v2620_v28 = vrot.slane %v2256_v48, 10  ;;  %vm2326_vm3 = vcmp.eq.f32.partialorder %v3875_v33, 0.0 }
 0x197   : > { %v2369_v20 = vadd.f32 %v2631_v4, %v2364_v43  ;;  %vm2420_vm8 = vcmask 1043459   ;;  %vm2427_vm4 = vcmask 3075  }
 0x198   : > { %2205 = vmatpush1.bf16.msra.mxu1 %v2154_v42  ;;  %v2624_v63 = vrot.slane %v2279_v23, 9  ;;  %v2261_v17 = vadd.f32 %v2619_v30, %v2256_v48  ;;  %v2625_v31 = vrot.slane %v2279_v23, 10 }
 0x199   : > { %2617 = vmatmul.mubr.msk.bf16.vlgmr.msra.gmra.mrb[0].mxu0 %vm2157_vm5, %v2156_v2 }
 0x19a   : > { %v2284_v24 = vadd.f32 %v2624_v63, %v2279_v23  ;;  %v2265_v61 = vadd.f32 %v2620_v28, %v2261_v17  ;;  %v2373_v23 = vadd.f32 %v2632_v25, %v2369_v20 }
 0x19b   : > { %2618 = vmatmul.mubr.msk.bf16.vlgmr.msra.gmra.mrb[0].mxu1 %vm2157_vm5, %v2156_v2 }
 0x19c   : > { %v2288_v18 = vadd.f32 %v2625_v31, %v2284_v24  ;;  %v2266_v26 = vmul.f32 1.442695, %v2265_v61 }
 0x19e   : > { %v2289_v60 = vmul.f32 1.442695, %v2288_v18  ;;  %2734 = vpow2.f32 %v2266_v26 }
 0x1a0   : > { %2736 = vpow2.f32 %v2289_v60  ;;  %v4052_v60 = vld [vmem:[#allocation3_spill] sm:$0xff] }
 0x1a8   : > { %v2735_v9 = vpop.eup %2734 }
 0x1a9   : > { %v2268_v35 = vmul.f32 %v3875_v33, %v2735_v9  ;;  %v2272_v14 = vmul.f32 %v2735_v9, %v2621_v34  ;;  %v2276_v46 = vmul.f32 %v2735_v9, %v2622_v13  ;;  %v2412_v9 = vsub.s32 3, %v4052_v60 }
 0x1aa   : > { %v2737_v16 = vpop.eup %2736  ;;  %v2390_v13 = vmax.f32 %v2373_v23, 1e-16 }
 0x1ab   : > { %v2291_v0 = vmul.f32 %v2737_v16, %v2623_v45  ;;  %v2297_v15 = vmul.f32 %v2737_v16, %v2626_v10  ;;  %v2302_v6 = vmul.f32 %v2737_v16, %v2627_v22 }
 0x1ac   : > { %2738 = vrsqrt.f32 %v2390_v13 }
 0x1ad   : > { %v2292_v59 = vadd.f32 %v2291_v0, %v2268_v35  ;;  %v2298_v53 = vadd.f32 %v2297_v15, %v2272_v14  ;;  %v2303_v12 = vadd.f32 %v2302_v6, %v2276_v46  ;;  %v2416_v35 = vsub.s32 7, %v4052_v60 }
 0x1af   : > { %v2304_v49 = vmul.f32 %v2292_v59, %v292_v39  ;;  %v2310_v50 = vrot.slane %v2298_v53, 7  ;;  %v2318_v19 = vrot.slane %v2303_v12, 6 }
 0x1b1   : > { %v2306_v32 = vrot.slane %v2304_v49, 5  ;;  %v2312_v3 = vmul.f32 %v2310_v50, %v292_v39  ;;  %v2320_v5 = vmul.f32 %v2318_v19, %v292_v39 }
 0x1b3   : > { %v2308_v62 = vadd.f32 %v2306_v32, %v292_v39  ;;  %v2314_v1 = vrot.slane %v2312_v3, 6  ;;  %v2322_v7 = vrot.slane %v2320_v5, 7 }
 0x1b5   : > { %v2316_v41 = vadd.f32 %v2314_v1, %v2308_v62 }
 0x1b6   : > { %v2739_v58 = vpop.eup %2738 }
 0x1b7   : > { %v2324_v51 = vadd.f32 %v2322_v7, %v2316_v41 }
 0x1b9   : > { %v2325_v31 = vmul.f32 %v2324_v51, %v2324_v51 }
 0x1bb   : > { %v2451_v15 = vrot.slane %v2325_v31, %v2412_v9  ;;  %v2455_v53 = vrot.slane %v2325_v31, %v2416_v35 }
 0x1bd   : > { %v2458_v32 = vsel %vm2420_vm8, %v2451_v15, 0.0 }
 0x26c   : > { %v2195_v56 = vpop.f32.mrb[0].mxu0 }
 0x26d   : > { %v2253_v37 = vadd.f32 %v2252_v55, %v2195_v56  ;;  %v2197_v29 = vpop.f32.mrb[1].mxu0 }
 0x26e   : > { %v2236_v27 = vpop.f32.mrb[0].mxu1  ;;  %v2254_v44 = vadd.f32 %v2252_v55, %v2197_v29  ;;  %v2199_v11 = vpop.f32.mrb[2].mxu0 }
 0x26f   : > { %v2374_v40 = vmul.f32 %v2236_v27, %v2236_v27  ;;  %v2238_v21 = vpop.f32.mrb[1].mxu1  ;;  %v2338_v42 = vsub.f32 %v2253_v37, %v2331_v38  ;;  %v2200_v2 = vpop.f32.mrb[3].mxu0 }
 0x270   : > { %v2350_v45 = vcombine.low %v2236_v27, %v2238_v21  ;;  %v2375_v52 = vmul.f32 %v2238_v21, %v2238_v21  ;;  %v2240_v8 = vpop.f32.mrb[2].mxu1  ;;  %v2339_v48 = vsub.f32 %v2254_v44, %v2335_v47 }
 0x271   : > { %v2378_v30 = vrot.slane %v2374_v40, 1  ;;  %v2241_v63 = vpop.f32.mrb[3].mxu1  ;;  %v2340_v17 = vmul.f32 %v2338_v42, %v2338_v42  ;;  %v2384_v18 = vrot.slane %v2374_v40, 2 }
 0x272   : > { %v2379_v28 = vrot.slane %v2375_v52, 1  ;;  %v2341_v24 = vmul.f32 %v2339_v48, %v2339_v48  ;;  %v2628_v26 = vrot.slane %v2350_v45, 9  ;;  %v2385_v10 = vrot.slane %v2375_v52, 2 }
 0x273   : > { %v2382_v61 = vadd.f32 %v2378_v30, %v2374_v40 }
 0x274   : > { %v2383_v34 = vadd.f32 %v2379_v28, %v2375_v52  ;;  %v2344_v16 = vcombine.low %v2340_v17, %v2341_v24  ;;  %v2354_v59 = vmul.f32 %v2628_v26, %v292_v39  ;;  %v2459_v39 = vsel %vm2420_vm8, %v2455_v53, 0.0 }
 0x275   : > { %v2388_v22 = vadd.f32 %v2384_v18, %v2382_v61  ;;  %v2460_v62 = vadd.f32 %v2459_v39, %v2458_v32 }
 0x276   : > { %v2389_v14 = vadd.f32 %v2385_v10, %v2383_v34  ;;  %v2345_v0 = vrot.slane %v2344_v16, 5  ;;  %v2629_v3 = vrot.slane %v2354_v59, 9  ;;  %v2630_v5 = vrot.slane %v2354_v59, 10 }
 0x277   : > { %v2393_v46 = vmax.f32 %v2388_v22, 1e-16 }
 0x278   : > { %v2394_v6 = vmax.f32 %v2389_v14, 1e-16  ;;  %v2347_v12 = vsel %vm2326_vm3, %v2345_v0, 0.0  ;;  %v2359_v1 = vadd.f32 %v2629_v3, %v2354_v59 }
 0x279   : > { %2740 = vrsqrt.f32 %v2393_v46  ;;  %v2413_v49 = vrot.slane %v2347_v12, %v2412_v9  ;;  %v2417_v50 = vrot.slane %v2347_v12, %v2416_v35 }
 0x27a   : > { %2742 = vrsqrt.f32 %v2394_v6  ;;  %v2363_v57 = vadd.f32 %v2630_v5, %v2359_v1 }
 0x27b   : > { %v2421_v19 = vsel %vm2420_vm8, %v2413_v49, 0.0  ;;  %v2422_v43 = vsel %vm2420_vm8, %v2417_v50, 0.0 }
 0x27c   : > { %v2423_v54 = vadd.f32 %v2422_v43, %v2421_v19  ;;  %v2392_v7 = vmul.f32 %v2739_v58, %v2363_v57 }
 0x27e   : > { %2424 = vadd.xlane.f32.xlu0 %v2423_v54 }
 0x282   : > { %2461 = vadd.xlane.f32.xlu0 %v2460_v62 }
 0x283   : > { %v2741_v4 = vpop.eup %2740 }
 0x284   : > { %v2743_v55 = vpop.eup %2742 }
 0x285   : > { %v2399_v41 = vcombine.low %v2741_v4, %v2743_v55 }
 0x287   : > { %v2633_v38 = vrot.slane %v2399_v41, 9 }
 0x289   : > { %v2403_v56 = vmul.f32 %v2633_v38, %v2392_v7 }
 0x28b   : > { %v2404_v36 = vsub.f32 1.0, %v2403_v56 }
 0x28d   : > { %v2406_v47 = vrot.slane %v2404_v36, 5 }
 0x28f   : > { %v2408_v20 = vsel %vm2326_vm3, %v2406_v47, 0.0 }
 0x290   : > { %v2433_v25 = vrot.slane %v2408_v20, %v2412_v9  ;;  %v2437_v37 = vrot.slane %v2408_v20, %v2416_v35 }
 0x292   : > { %v2440_v29 = vsel %vm2420_vm8, %v2433_v25, 0.0  ;;  %v2441_v27 = vsel %vm2420_vm8, %v2437_v37, 0.0 }
 0x293   : > { %v2442_v44 = vadd.f32 %v2441_v27, %v2440_v29 }
 0x295   : > { %2443 = vadd.xlane.f32.xlu1 %v2442_v44 }
 0x30b   : > { %v2425_v11 = vpop.xlane.xlu0 %2424 }
 0x30c   : > { %v2426_v51 = vmul.f32 19.53125, %v2425_v11 }
 0x30e   : > { %2428 = vst.msk [vmem:[%s288_s26 - $0x3] sm:$0x8] %vm2427_vm4, %v2426_v51 }
 0x30f   : > { %v2462_v40 = vpop.xlane.xlu0 %2461 }
 0x310   : > { %v2463_v33 = vmul.f32 3.90625, %v2462_v40 }
 0x312   : > { %2464 = vst.msk [vmem:[%s288_s26 - $0x1] sm:$0x8] %vm2427_vm4, %v2463_v33 }
 0x322   : > { %v2444_v21 = vpop.xlane.xlu1 %2443 }
 0x323   : > { %v2445_v42 = vmul.f32 1.953125, %v2444_v21 }
 0x325   : > { %2446 = vst.msk [vmem:[%s288_s26 - $0x2] sm:$0x8] %vm2427_vm4, %v2445_v42 }
 0x326 PF: > { %s18_s23 = sadd.s32 1, %s2751_s23  }
 0x327   : > { %p15_p4 = scmp.ge.s32.totalorder %s18_s23, 4  }
 0x329   :  { %17 = sbr.rel (!%p15_p4) target bundleno = 3 (0x3), region = 80 }

</bundles_post_ra>
